<compile_context>
chip_gen: v7x
topology: tpu7x:2x2x1
jax: 0.10.0
libtpu: 0.0.40
codegen_flags: <defaults>
</compile_context>

<pallas_src>
import math

import jax
import jax.numpy as jnp
import numpy as np
from jax import lax
from jax.experimental import pallas as pl
from jax.experimental.pallas import tpu as pltpu

# ----- small synthetic CLIP-text config -----
B, S, D, H, L, P = 2, 8, 32, 4, 2, 32     # batch, seq, width, heads, layers, proj
DH = D // H                               # 8
MLP = 4 * D                               # 128 -> already lane dense
EPS = 1e-5

# lane-padded widths (TPU vreg lane width = 128)
Dp = 128                                  # padded model width
Pp = 128                                  # padded projection width
HP = 128                                  # padded per-head width (DH=8 -> 128)
QKVW = 3 * H * HP                         # packed qkv output width (1536)
BS = B * S                                # batch folded into the sublane axis
INV_D = 1.0 / D
NEG_INF = -1e9

_PER_LAYER = ("ln1g", "ln1b", "wqkv", "bqkv", "wo", "bo",
              "ln2g", "ln2b", "wfc", "bfc", "wp", "bp")


# ---------------------------------------------------------------------------
# Fused kernel: all L residual blocks + ln_final + EOT gather + projection
# ---------------------------------------------------------------------------
def fused_text_encoder_kernel(
        x0_ref, tok_ref,
        ln1g_ref, ln1b_ref, wqkv_ref, bqkv_ref, wo_ref, bo_ref,
        ln2g_ref, ln2b_ref, wfc_ref, bfc_ref, wp_ref, bp_ref,
        lnfg_ref, lnfb_ref, proj_ref,
        emb_ref, feat_ref):
    l = pl.program_id(0)

    # The emb output block (constant index across the layer grid) doubles as the
    # VMEM-resident residual-stream buffer; load the pos-embedded prompts once.
    @pl.when(l == 0)
    def _init():
        emb_ref[...] = x0_ref[...]

    # Lane mask over the D real channels; padded lanes are exactly zero
    # end-to-end, and LN gammas/betas are zero there too.
    lane_mask = lax.broadcasted_iota(jnp.int32, (BS, Dp), 1) < D

    def ln(v, g, b):
        # two-pass variance (numerically stable), masked to the real channels
        mu = jnp.sum(v, axis=-1, keepdims=True) * INV_D
        d = jnp.where(lane_mask, v - mu, 0.0)
        var = jnp.sum(d * d, axis=-1, keepdims=True) * INV_D
        return d * lax.rsqrt(var + EPS) * g + b

    x = emb_ref[...]                                      # (BS, Dp) f32 residual

    # ---- attention branch: x + W_o(MHA(ln_1(x))) with causal mask ----
    h = ln(x, ln1g_ref[0], ln1b_ref[0]).astype(jnp.bfloat16)
    qkv = jnp.dot(h, wqkv_ref[0],
                  preferred_element_type=jnp.float32) + bqkv_ref[0]
    qkv3 = qkv.astype(jnp.bfloat16).reshape(B, S, QKVW)   # head slabs are whole vregs

    # causal mask built in-kernel, pre-broadcast to (B,S,S) (one add per head,
    # zero broadcast ops inside the loop)
    row = lax.broadcasted_iota(jnp.int32, (B, S, S), 1)
    col = lax.broadcasted_iota(jnp.int32, (B, S, S), 2)
    causal = jnp.where(col <= row, 0.0, NEG_INF).astype(jnp.float32)

    outs = []
    for hh in range(H):                                   # static loop, 128-lane slabs
        q_h = qkv3[:, :, hh * HP:(hh + 1) * HP]
        k_h = qkv3[:, :, H * HP + hh * HP:H * HP + (hh + 1) * HP]
        v_h = qkv3[:, :, 2 * H * HP + hh * HP:2 * H * HP + (hh + 1) * HP]
        s = jnp.einsum('bqd,bkd->bqk', q_h, k_h,
                       preferred_element_type=jnp.float32) + causal
        m = jnp.max(s, axis=-1, keepdims=True)
        e = jnp.exp(s - m)
        p = e * pl.reciprocal(jnp.sum(e, axis=-1, keepdims=True), approx=True)
        outs.append(jnp.einsum('bqk,bkd->bqd', p.astype(jnp.bfloat16), v_h,
                               preferred_element_type=jnp.float32))
    # lane-concat of whole 128-lane head slabs + ONE output-projection matmul
    o = jnp.concatenate(outs, axis=-1).reshape(BS, H * HP).astype(jnp.bfloat16)
    attn = jnp.dot(o, wo_ref[0], preferred_element_type=jnp.float32) + bo_ref[0]
    x = x + attn

    # ---- MLP branch: x + c_proj(QuickGELU(c_fc(ln_2(x)))) ----
    h2 = ln(x, ln2g_ref[0], ln2b_ref[0]).astype(jnp.bfloat16)
    h2 = jnp.dot(h2, wfc_ref[0], preferred_element_type=jnp.float32) + bfc_ref[0]
    h2 = h2 * pl.reciprocal(1.0 + jnp.exp(-1.702 * h2), approx=True)   # QuickGELU
    h2 = jnp.dot(h2.astype(jnp.bfloat16), wp_ref[0],
                 preferred_element_type=jnp.float32) + bp_ref[0]
    x = x + h2

    @pl.when(l < L - 1)
    def _store():
        emb_ref[...] = x                                  # resident across layers

    # ---- fused finalize on last layer: EOT gather, projection, ln_final ----
    @pl.when(l == L - 1)
    def _finalize():
        # EOT position = first argmax of the token ids per prompt; gather is a
        # one-hot matmul from the PRE-ln_final hidden state (as in PyTorch).
        tok = tok_ref[...]                                # (B, S) int32
        maxv = jnp.max(tok, axis=-1, keepdims=True)
        iota_s = lax.broadcasted_iota(jnp.int32, (B, S), 1)
        idx = jnp.min(jnp.where(tok == maxv, iota_s, S), axis=-1, keepdims=True)
        iota_b = lax.broadcasted_iota(jnp.int32, (B, 1), 0)
        flat = idx + iota_b * S                           # flat row into (BS, Dp)
        sel = (lax.broadcasted_iota(jnp.int32, (B, BS), 1) == flat).astype(jnp.float32)
        gathered = jnp.dot(sel, x, preferred_element_type=jnp.float32)     # (B, Dp)
        feat_ref[...] = jnp.dot(gathered.astype(jnp.bfloat16), proj_ref[...],
                                preferred_element_type=jnp.float32)        # (B, Pp)
        emb_ref[...] = ln(x, lnfg_ref[...], lnfb_ref[...])                 # ln_final


def fused_text_encoder(x0, tok, kp):
    in_specs = [
        pl.BlockSpec((BS, Dp), lambda l: (0, 0)),         # x0 (pos-embedded prompts)
        pl.BlockSpec((B, S), lambda l: (0, 0)),           # token ids
    ]
    args = [x0, tok]
    for name in _PER_LAYER:                               # stacked (L, ...) weights
        a = kp[name]
        in_specs.append(pl.BlockSpec((1,) + a.shape[1:], lambda l: (l, 0, 0)))
        args.append(a)
    for name in ("lnfg", "lnfb", "proj"):                 # final-block weights
        a = kp[name]
        in_specs.append(pl.BlockSpec(a.shape, lambda l: (0, 0)))
        args.append(a)

    return pl.pallas_call(
        fused_text_encoder_kernel,
        out_shape=(jax.ShapeDtypeStruct((BS, Dp), jnp.float32),   # ln_final(x)
                   jax.ShapeDtypeStruct((B, Pp), jnp.float32)),   # text features
        grid=(L,),
        in_specs=in_specs,
        out_specs=(pl.BlockSpec((BS, Dp), lambda l: (0, 0)),
                   pl.BlockSpec((B, Pp), lambda l: (0, 0))),
        # Sequential layer axis revisits the resident activations/outputs.
        # At real CLIP dims: set vmem_limit_bytes here (v7x 64 MiB physical,
        # v5e 16 MiB default scoped) and add a leading "parallel" batch-row
        # axis for v7x's second TensorCore.
        compiler_params=pltpu.CompilerParams(dimension_semantics=("arbitrary",)),
    )(*args)


# ---------------------------------------------------------------------------
# Host-side (one-off) weight prep: transpose, fold scale, head/lane pad, stack
# ---------------------------------------------------------------------------
def _pad_last(a, target):
    return jnp.pad(a, [(0, 0)] * (a.ndim - 1) + [(0, target - a.shape[-1])])


def _pack_head_cols(w):
    # (rows, H*DH) -> (rows, H*HP): each head's DH output cols in its own
    # zero-padded 128-lane slab.
    return jnp.concatenate(
        [jnp.pad(w[:, h * DH:(h + 1) * DH], ((0, 0), (0, HP - DH)))
         for h in range(H)], axis=1)


def _pack_head_rows(w):
    # (H*DH, cols) -> (H*HP, cols): matching zero-padded input rows for W_o.
    return jnp.concatenate(
        [jnp.pad(w[h * DH:(h + 1) * DH, :], ((0, HP - DH), (0, 0)))
         for h in range(H)], axis=0)


def prep_params(params):
    scale = 1.0 / math.sqrt(DH)
    wdt = jnp.bfloat16                                    # streamed weight dtype
    stk = {k: [] for k in _PER_LAYER}
    for lyr in params["layers"]:
        wq, wk, wv = jnp.split(lyr["wqkv"], 3, axis=0)    # each (D, D), (out,in)
        wqkv = jnp.concatenate([_pack_head_cols(wq.T * scale),
                                _pack_head_cols(wk.T),
                                _pack_head_cols(wv.T)], axis=1)      # (D, 3*H*HP)
        stk["wqkv"].append(jnp.pad(wqkv, ((0, Dp - D), (0, 0))).astype(wdt))
        bq, bk, bv = jnp.split(lyr["bqkv"].reshape(1, -1), 3, axis=1)
        stk["bqkv"].append(jnp.concatenate([_pack_head_cols(bq * scale),
                                            _pack_head_cols(bk),
                                            _pack_head_cols(bv)], axis=1))  # (1, 3*H*HP) f32
        stk["wo"].append(_pad_last(_pack_head_rows(lyr["wo"].T), Dp).astype(wdt))  # (H*HP, Dp)
        stk["bo"].append(_pad_last(lyr["bo"], Dp))
        stk["ln1g"].append(_pad_last(lyr["ln1g"], Dp))
        stk["ln1b"].append(_pad_last(lyr["ln1b"], Dp))
        stk["ln2g"].append(_pad_last(lyr["ln2g"], Dp))
        stk["ln2b"].append(_pad_last(lyr["ln2b"], Dp))
        stk["wfc"].append(jnp.pad(lyr["wfc"].T, ((0, Dp - D), (0, 0))).astype(wdt))  # (Dp, MLP)
        stk["bfc"].append(lyr["bfc"])                                   # (1, MLP)
        stk["wp"].append(_pad_last(lyr["wp"].T, Dp).astype(wdt))        # (MLP, Dp)
        stk["bp"].append(_pad_last(lyr["bp"], Dp))                      # (1, Dp)
    kp = {k: jnp.stack(v, axis=0) for k, v in stk.items()}
    kp["lnfg"] = _pad_last(params["lnfg"].reshape(1, D), Dp)
    kp["lnfb"] = _pad_last(params["lnfb"].reshape(1, D), Dp)
    kp["proj"] = jnp.pad(params["proj"], ((0, Dp - D), (0, Pp - P))).astype(wdt)
    kp["pos_emb"] = params["pos_emb"]

    # Padding invariant (correctness-critical): every lane-padded channel beyond
    # the real width must be exactly zero — including the LN gammas.
    assert float(jnp.max(jnp.abs(kp["lnfg"][:, D:]))) == 0.0
    assert float(jnp.max(jnp.abs(kp["ln1g"][:, :, D:]))) == 0.0
    assert float(jnp.max(jnp.abs(kp["wqkv"][:, D:, :].astype(jnp.float32)))) == 0.0
    return kp


# ---------------------------------------------------------------------------
# Wrapper == TextEncoder.forward
# ---------------------------------------------------------------------------
def text_encoder_forward(prompts, tokenized_prompts, kp):
    # glue (plain JAX): pos-emb add, lane padding, batch folding
    x0 = prompts + kp["pos_emb"][None]                    # (B, S, D)
    x0 = _pad_last(x0, Dp).reshape(BS, Dp)
    tok = tokenized_prompts.astype(jnp.int32)

    emb_p, feat_p = fused_text_encoder(x0, tok, kp)

    text_emb = emb_p.reshape(B, S, Dp)[:, :, :D]
    text_feat = feat_p[:, :P]
    text_mask = jnp.where(tokenized_prompts == 0, tokenized_prompts, 1)
    return text_feat, text_emb, text_mask


# ---------------------------------------------------------------------------
# Pure-JAX reference (mirrors PyTorch semantics) for a correctness check
# ---------------------------------------------------------------------------
def _layernorm_ref(v, g, b):
    mu = jnp.mean(v, axis=-1, keepdims=True)
    var = jnp.mean((v - mu) ** 2, axis=-1, keepdims=True)
    return (v - mu) * lax.rsqrt(var + EPS) * g + b


def ref_forward(prompts, tok, params):
    x = prompts + params["pos_emb"][None]
    causal = jnp.where(jnp.tril(jnp.ones((S, S), bool)), 0.0, NEG_INF)
    for lyr in params["layers"]:
        h = _layernorm_ref(x, lyr["ln1g"].reshape(-1), lyr["ln1b"].reshape(-1))
        qkv = h @ lyr["wqkv"].T + lyr["bqkv"].reshape(-1)
        q, k, v = jnp.split(qkv, 3, axis=-1)
        q = q.reshape(B, S, H, DH) * (1.0 / math.sqrt(DH))
        k = k.reshape(B, S, H, DH)
        v = v.reshape(B, S, H, DH)
        sc = jnp.einsum('bqhd,bkhd->bhqk', q, k) + causal
        p = jax.nn.softmax(sc, axis=-1)
        out = jnp.einsum('bhqk,bkhd->bqhd', p, v).reshape(B, S, D)
        x = x + out @ lyr["wo"].T + lyr["bo"].reshape(-1)
        h2 = _layernorm_ref(x, lyr["ln2g"].reshape(-1), lyr["ln2b"].reshape(-1))
        h2 = h2 @ lyr["wfc"].T + lyr["bfc"].reshape(-1)
        h2 = h2 * jax.nn.sigmoid(1.702 * h2)
        x = x + h2 @ lyr["wp"].T + lyr["bp"].reshape(-1)
    emb = _layernorm_ref(x, params["lnfg"].reshape(-1), params["lnfb"].reshape(-1))
    idx = jnp.argmax(tok, axis=-1)
    feat = x[jnp.arange(B), idx] @ params["proj"]
    mask = jnp.where(tok == 0, tok, 1)
    return feat, emb, mask


# ---------------------------------------------------------------------------
# Deterministic synthetic parameters (shapes implied by the CLIP text tower)
# ---------------------------------------------------------------------------
def init_params(key):
    def nrm(k, shape, scale=0.05):
        return scale * jax.random.normal(k, shape, jnp.float32)

    keys = jax.random.split(key, 2 + 8 * L)
    params = {
        "pos_emb": nrm(keys[0], (S, D), 0.1),
        "lnfg": jnp.ones((1, 1, D), jnp.float32),
        "lnfb": jnp.zeros((1, 1, D), jnp.float32),
        "proj": nrm(keys[1], (D, P)),
        "layers": [],
    }
    ki = 2
    for _ in range(L):
        lyr = {
            "ln1g": jnp.ones((1, D), jnp.float32),
            "ln1b": jnp.zeros((1, D), jnp.float32),
            "wqkv": nrm(keys[ki + 0], (3 * D, D)),
            "bqkv": nrm(keys[ki + 1], (1, 3 * D), 0.01),
            "wo":   nrm(keys[ki + 2], (D, D)),
            "bo":   nrm(keys[ki + 3], (1, D), 0.01),
            "ln2g": jnp.ones((1, D), jnp.float32),
            "ln2b": jnp.zeros((1, D), jnp.float32),
            "wfc":  nrm(keys[ki + 4], (MLP, D)),
            "bfc":  nrm(keys[ki + 5], (1, MLP), 0.01),
            "wp":   nrm(keys[ki + 6], (D, MLP)),
            "bp":   nrm(keys[ki + 7], (1, D), 0.01),
        }
        params["layers"].append(lyr)
        ki += 8
    return params


if __name__ == "__main__":
    key = jax.random.PRNGKey(0)
    kp_key, kx = jax.random.split(key)
    params = init_params(kp_key)
    kernel_params = prep_params(params)          # one-off host-side weight prep

    # prompts: learned context + token embeddings, shape (B, S, D)
    prompts = jax.random.normal(kx, (B, S, D), jnp.float32)
    # tokenized prompts: SOT ... EOT (largest id) followed by padding zeros
    tokenized = jnp.array(
        [[49406, 320, 1125, 49407, 0, 0, 0, 0],
         [49406, 2, 3, 4, 49407, 0, 0, 0]], dtype=jnp.int32)

    feat, emb, mask = text_encoder_forward(prompts, tokenized, kernel_params)
    jax.block_until_ready((feat, emb, mask))

    # f32 reference vs kernel (bf16 weight streaming + approx reciprocals)
    rfeat, remb, rmask = ref_forward(prompts, tokenized, params)
    np.testing.assert_allclose(np.asarray(feat), np.asarray(rfeat), rtol=2e-2, atol=2e-2)
    np.testing.assert_allclose(np.asarray(emb), np.asarray(remb), rtol=2e-2, atol=2e-2)
    np.testing.assert_array_equal(np.asarray(mask), np.asarray(rmask))

    print("KERNEL_OK")
</pallas_src>

<mosaic_0001>
module attributes {stable_mosaic.version = 11 : i64} {
  func.func @fused_text_encoder_kernel(%arg0: i32, %arg1: memref<16x128xf32, #tpu.memory_space<vmem>>, %arg2: memref<2x8xi32, #tpu.memory_space<vmem>>, %arg3: memref<1x1x128xf32, #tpu.memory_space<vmem>>, %arg4: memref<1x1x128xf32, #tpu.memory_space<vmem>>, %arg5: memref<1x128x1536xbf16, #tpu.memory_space<vmem>>, %arg6: memref<1x1x1536xf32, #tpu.memory_space<vmem>>, %arg7: memref<1x512x128xbf16, #tpu.memory_space<vmem>>, %arg8: memref<1x1x128xf32, #tpu.memory_space<vmem>>, %arg9: memref<1x1x128xf32, #tpu.memory_space<vmem>>, %arg10: memref<1x1x128xf32, #tpu.memory_space<vmem>>, %arg11: memref<1x128x128xbf16, #tpu.memory_space<vmem>>, %arg12: memref<1x1x128xf32, #tpu.memory_space<vmem>>, %arg13: memref<1x128x128xbf16, #tpu.memory_space<vmem>>, %arg14: memref<1x1x128xf32, #tpu.memory_space<vmem>>, %arg15: memref<1x128xf32, #tpu.memory_space<vmem>>, %arg16: memref<1x128xf32, #tpu.memory_space<vmem>>, %arg17: memref<128x128xbf16, #tpu.memory_space<vmem>>, %arg18: memref<16x128xf32, #tpu.memory_space<vmem>>, %arg19: memref<2x128xf32, #tpu.memory_space<vmem>>) attributes {dimension_semantics = [#tpu.dimension_semantics<arbitrary>], iteration_bounds = array<i64: 2>, scalar_prefetch = 0 : i64, scratch_operands = 0 : i64, tpu.core_type = #tpu.core_type<tc>, window_params = [{pipeline_mode = #tpu.pipeline_mode<synchronous>, transform_indices = @transform_0, window_bounds = array<i64: 16, 128>}, {pipeline_mode = #tpu.pipeline_mode<synchronous>, transform_indices = @transform_1, window_bounds = array<i64: 2, 8>}, {transform_indices = @transform_2, window_bounds = array<i64: 1, 1, 128>}, {transform_indices = @transform_3, window_bounds = array<i64: 1, 1, 128>}, {transform_indices = @transform_4, window_bounds = array<i64: 1, 128, 1536>}, {transform_indices = @transform_5, window_bounds = array<i64: 1, 1, 1536>}, {transform_indices = @transform_6, window_bounds = array<i64: 1, 512, 128>}, {transform_indices = @transform_7, window_bounds = array<i64: 1, 1, 128>}, {transform_indices = @transform_8, window_bounds = array<i64: 1, 1, 128>}, {transform_indices = @transform_9, window_bounds = array<i64: 1, 1, 128>}, {transform_indices = @transform_10, window_bounds = array<i64: 1, 128, 128>}, {transform_indices = @transform_11, window_bounds = array<i64: 1, 1, 128>}, {transform_indices = @transform_12, window_bounds = array<i64: 1, 128, 128>}, {transform_indices = @transform_13, window_bounds = array<i64: 1, 1, 128>}, {pipeline_mode = #tpu.pipeline_mode<synchronous>, transform_indices = @transform_14, window_bounds = array<i64: 1, 128>}, {pipeline_mode = #tpu.pipeline_mode<synchronous>, transform_indices = @transform_15, window_bounds = array<i64: 1, 128>}, {pipeline_mode = #tpu.pipeline_mode<synchronous>, transform_indices = @transform_16, window_bounds = array<i64: 128, 128>}, {pipeline_mode = #tpu.pipeline_mode<synchronous>, transform_indices = @transform_17, window_bounds = array<i64: 16, 128>}, {pipeline_mode = #tpu.pipeline_mode<synchronous>, transform_indices = @transform_18, window_bounds = array<i64: 2, 128>}]} {
    %c0_i32 = arith.constant 0 : i32
    %0 = arith.cmpi eq, %arg0, %c0_i32 : i32
    %1 = arith.extui %0 : i1 to i32
    %c0_i32_0 = arith.constant 0 : i32
    %2 = arith.cmpi ne, %1, %c0_i32_0 : i32
    scf.if %2 {
      %c0_76 = arith.constant 0 : index
      %c0_77 = arith.constant 0 : index
      %184 = vector.load %arg1[%c0_76, %c0_77] : memref<16x128xf32, #tpu.memory_space<vmem>>, vector<16x128xf32>
      %c0_78 = arith.constant 0 : index
      %c0_79 = arith.constant 0 : index
      %185 = vector.load %arg18[%c0_78, %c0_79] : memref<16x128xf32, #tpu.memory_space<vmem>>, vector<16x128xf32>
      tpu.vector_store %arg18[%c0_78, %c0_79], %184 {strides = array<i32>} : memref<16x128xf32, #tpu.memory_space<vmem>>, vector<16x128xf32>,
    } else {
    }
    %3 = tpu.iota {dimensions = array<i32: 1>} : vector<16x128xi32>
    %c32_i32 = arith.constant 32 : i32
    %4 = vector.broadcast %c32_i32 : i32 to vector<16x128xi32>
    %5 = arith.cmpi slt, %3, %4 : vector<16x128xi32>
    %c0 = arith.constant 0 : index
    %c0_1 = arith.constant 0 : index
    %6 = vector.load %arg18[%c0, %c0_1] : memref<16x128xf32, #tpu.memory_space<vmem>>, vector<16x128xf32>
    %c0_2 = arith.constant 0 : index
    %c0_3 = arith.constant 0 : index
    %c0_4 = arith.constant 0 : index
    %7 = vector.load %arg3[%c0_2, %c0_3, %c0_4] : memref<1x1x128xf32, #tpu.memory_space<vmem>>, vector<1x1x128xf32>
    %8 = vector.shape_cast %7 : vector<1x1x128xf32> to vector<1x128xf32>
    %c0_5 = arith.constant 0 : index
    %c0_6 = arith.constant 0 : index
    %c0_7 = arith.constant 0 : index
    %9 = vector.load %arg4[%c0_5, %c0_6, %c0_7] : memref<1x1x128xf32, #tpu.memory_space<vmem>>, vector<1x1x128xf32>
    %10 = vector.shape_cast %9 : vector<1x1x128xf32> to vector<1x128xf32>
    %cst = arith.constant dense<0.000000e+00> : vector<16xf32>
    %11 = vector.multi_reduction <add>, %6, %cst [1] : vector<16x128xf32> to vector<16xf32>
    %12 = vector.shape_cast %11 : vector<16xf32> to vector<16x1xf32>
    %cst_8 = arith.constant 3.125000e-02 : f32
    %13 = vector.broadcast %cst_8 : f32 to vector<16x1xf32>
    %14 = arith.mulf %12, %13 : vector<16x1xf32>
    %15 = vector.broadcast %14 : vector<16x1xf32> to vector<16x128xf32>
    %16 = arith.subf %6, %15 : vector<16x128xf32>
    %cst_9 = arith.constant 0.000000e+00 : f32
    %17 = vector.broadcast %cst_9 : f32 to vector<16x128xf32>
    %18 = arith.select %5, %16, %17 : vector<16x128xi1>, vector<16x128xf32>
    %19 = arith.mulf %18, %18 : vector<16x128xf32>
    %cst_10 = arith.constant dense<0.000000e+00> : vector<16xf32>
    %20 = vector.multi_reduction <add>, %19, %cst_10 [1] : vector<16x128xf32> to vector<16xf32>
    %21 = vector.shape_cast %20 : vector<16xf32> to vector<16x1xf32>
    %cst_11 = arith.constant 3.125000e-02 : f32
    %22 = vector.broadcast %cst_11 : f32 to vector<16x1xf32>
    %23 = arith.mulf %21, %22 : vector<16x1xf32>
    %cst_12 = arith.constant 9.99999974E-6 : f32
    %24 = vector.broadcast %cst_12 : f32 to vector<16x1xf32>
    %25 = arith.addf %23, %24 : vector<16x1xf32>
    %26 = math.rsqrt %25 : vector<16x1xf32>
    %27 = vector.broadcast %26 : vector<16x1xf32> to vector<16x128xf32>
    %28 = arith.mulf %18, %27 : vector<16x128xf32>
    %29 = vector.broadcast %8 : vector<1x128xf32> to vector<16x128xf32>
    %30 = arith.mulf %28, %29 : vector<16x128xf32>
    %31 = vector.broadcast %10 : vector<1x128xf32> to vector<16x128xf32>
    %32 = arith.addf %30, %31 : vector<16x128xf32>
    %33 = arith.truncf %32 : vector<16x128xf32> to vector<16x128xbf16>
    %c0_13 = arith.constant 0 : index
    %c0_14 = arith.constant 0 : index
    %c0_15 = arith.constant 0 : index
    %34 = vector.load %arg5[%c0_13, %c0_14, %c0_15] : memref<1x128x1536xbf16, #tpu.memory_space<vmem>>, vector<1x128x1536xbf16>
    %35 = vector.shape_cast %34 : vector<1x128x1536xbf16> to vector<128x1536xbf16>
    %cst_16 = arith.constant dense<0.000000e+00> : vector<16x1536xf32>
    %36 = tpu.matmul %33, %35, %cst_16 {dimension_numbers = #tpu.dot_dimension_numbers<[1], [0], [0], [1], [0, 0, 1, 1], [], []>} : vector<16x128xbf16>, vector<128x1536xbf16>, vector<16x1536xf32> -> vector<16x1536xf32>
    %c0_17 = arith.constant 0 : index
    %c0_18 = arith.constant 0 : index
    %c0_19 = arith.constant 0 : index
    %37 = vector.load %arg6[%c0_17, %c0_18, %c0_19] : memref<1x1x1536xf32, #tpu.memory_space<vmem>>, vector<1x1x1536xf32>
    %38 = vector.shape_cast %37 : vector<1x1x1536xf32> to vector<1x1536xf32>
    %39 = vector.broadcast %38 : vector<1x1536xf32> to vector<16x1536xf32>
    %40 = arith.addf %36, %39 : vector<16x1536xf32>
    %41 = arith.truncf %40 : vector<16x1536xf32> to vector<16x1536xbf16>
    %42 = vector.shape_cast %41 : vector<16x1536xbf16> to vector<2x8x1536xbf16>
    %43 = tpu.iota {dimensions = array<i32: 1>} : vector<2x8x8xi32>
    %44 = tpu.iota {dimensions = array<i32: 2>} : vector<2x8x8xi32>
    %45 = arith.cmpi sle, %44, %43 : vector<2x8x8xi32>
    %cst_20 = arith.constant 0.000000e+00 : f32
    %cst_21 = arith.constant -1.000000e+09 : f32
    %46 = vector.broadcast %cst_20 : f32 to vector<2x8x8xf32>
    %47 = vector.broadcast %cst_21 : f32 to vector<2x8x8xf32>
    %48 = arith.select %45, %46, %47 : vector<2x8x8xi1>, vector<2x8x8xf32>
    %49 = vector.extract_strided_slice %42 {offsets = [0, 0, 0], sizes = [2, 8, 128], strides = [1, 1, 1]} : vector<2x8x1536xbf16> to vector<2x8x128xbf16>
    %50 = vector.extract_strided_slice %42 {offsets = [0, 0, 512], sizes = [2, 8, 128], strides = [1, 1, 1]} : vector<2x8x1536xbf16> to vector<2x8x128xbf16>
    %51 = vector.extract_strided_slice %42 {offsets = [0, 0, 1024], sizes = [2, 8, 128], strides = [1, 1, 1]} : vector<2x8x1536xbf16> to vector<2x8x128xbf16>
    "tpu.trace_start"() <{level = 10 : i32, message = "bqd,bkd->bqk"}> : () -> ()
    %cst_22 = arith.constant dense<0.000000e+00> : vector<2x8x8xf32>
    %52 = tpu.matmul %49, %50, %cst_22 {dimension_numbers = #tpu.dot_dimension_numbers<[2], [2], [1], [1], [0, 0, 0, 1, 1, 1], [0], [0]>} : vector<2x8x128xbf16>, vector<2x8x128xbf16>, vector<2x8x8xf32> -> vector<2x8x8xf32>
    "tpu.trace_stop"() : () -> ()
    %53 = arith.addf %52, %48 : vector<2x8x8xf32>
    %cst_23 = arith.constant dense<0xFF800000> : vector<2x8xf32>
    %54 = vector.multi_reduction <maximumf>, %53, %cst_23 [2] : vector<2x8x8xf32> to vector<2x8xf32>
    %55 = vector.shape_cast %54 : vector<2x8xf32> to vector<2x8x1xf32>
    %56 = vector.broadcast %55 : vector<2x8x1xf32> to vector<2x8x8xf32>
    %57 = arith.subf %53, %56 : vector<2x8x8xf32>
    %58 = math.exp %57 : vector<2x8x8xf32>
    %cst_24 = arith.constant dense<0.000000e+00> : vector<2x8xf32>
    %59 = vector.multi_reduction <add>, %58, %cst_24 [2] : vector<2x8x8xf32> to vector<2x8xf32>
    %60 = vector.shape_cast %59 : vector<2x8xf32> to vector<2x8x1xf32>
    %61 = tpu.reciprocal %60 {approx = true} : vector<2x8x1xf32> -> vector<2x8x1xf32>
    %62 = vector.broadcast %61 : vector<2x8x1xf32> to vector<2x8x8xf32>
    %63 = arith.mulf %58, %62 : vector<2x8x8xf32>
    %64 = arith.truncf %63 : vector<2x8x8xf32> to vector<2x8x8xbf16>
    "tpu.trace_start"() <{level = 10 : i32, message = "bqk,bkd->bqd"}> : () -> ()
    %cst_25 = arith.constant dense<0.000000e+00> : vector<2x8x128xf32>
    %65 = tpu.matmul %64, %51, %cst_25 {dimension_numbers = #tpu.dot_dimension_numbers<[2], [1], [1], [2], [0, 0, 0, 1, 1, 2], [0], [0]>} : vector<2x8x8xbf16>, vector<2x8x128xbf16>, vector<2x8x128xf32> -> vector<2x8x128xf32>
    "tpu.trace_stop"() : () -> ()
    %66 = vector.extract_strided_slice %42 {offsets = [0, 0, 128], sizes = [2, 8, 128], strides = [1, 1, 1]} : vector<2x8x1536xbf16> to vector<2x8x128xbf16>
    %67 = vector.extract_strided_slice %42 {offsets = [0, 0, 640], sizes = [2, 8, 128], strides = [1, 1, 1]} : vector<2x8x1536xbf16> to vector<2x8x128xbf16>
    %68 = vector.extract_strided_slice %42 {offsets = [0, 0, 1152], sizes = [2, 8, 128], strides = [1, 1, 1]} : vector<2x8x1536xbf16> to vector<2x8x128xbf16>
    "tpu.trace_start"() <{level = 10 : i32, message = "bqd,bkd->bqk"}> : () -> ()
    %cst_26 = arith.constant dense<0.000000e+00> : vector<2x8x8xf32>
    %69 = tpu.matmul %66, %67, %cst_26 {dimension_numbers = #tpu.dot_dimension_numbers<[2], [2], [1], [1], [0, 0, 0, 1, 1, 1], [0], [0]>} : vector<2x8x128xbf16>, vector<2x8x128xbf16>, vector<2x8x8xf32> -> vector<2x8x8xf32>
    "tpu.trace_stop"() : () -> ()
    %70 = arith.addf %69, %48 : vector<2x8x8xf32>
    %cst_27 = arith.constant dense<0xFF800000> : vector<2x8xf32>
    %71 = vector.multi_reduction <maximumf>, %70, %cst_27 [2] : vector<2x8x8xf32> to vector<2x8xf32>
    %72 = vector.shape_cast %71 : vector<2x8xf32> to vector<2x8x1xf32>
    %73 = vector.broadcast %72 : vector<2x8x1xf32> to vector<2x8x8xf32>
    %74 = arith.subf %70, %73 : vector<2x8x8xf32>
    %75 = math.exp %74 : vector<2x8x8xf32>
    %cst_28 = arith.constant dense<0.000000e+00> : vector<2x8xf32>
    %76 = vector.multi_reduction <add>, %75, %cst_28 [2] : vector<2x8x8xf32> to vector<2x8xf32>
    %77 = vector.shape_cast %76 : vector<2x8xf32> to vector<2x8x1xf32>
    %78 = tpu.reciprocal %77 {approx = true} : vector<2x8x1xf32> -> vector<2x8x1xf32>
    %79 = vector.broadcast %78 : vector<2x8x1xf32> to vector<2x8x8xf32>
    %80 = arith.mulf %75, %79 : vector<2x8x8xf32>
    %81 = arith.truncf %80 : vector<2x8x8xf32> to vector<2x8x8xbf16>
    "tpu.trace_start"() <{level = 10 : i32, message = "bqk,bkd->bqd"}> : () -> ()
    %cst_29 = arith.constant dense<0.000000e+00> : vector<2x8x128xf32>
    %82 = tpu.matmul %81, %68, %cst_29 {dimension_numbers = #tpu.dot_dimension_numbers<[2], [1], [1], [2], [0, 0, 0, 1, 1, 2], [0], [0]>} : vector<2x8x8xbf16>, vector<2x8x128xbf16>, vector<2x8x128xf32> -> vector<2x8x128xf32>
    "tpu.trace_stop"() : () -> ()
    %83 = vector.extract_strided_slice %42 {offsets = [0, 0, 256], sizes = [2, 8, 128], strides = [1, 1, 1]} : vector<2x8x1536xbf16> to vector<2x8x128xbf16>
    %84 = vector.extract_strided_slice %42 {offsets = [0, 0, 768], sizes = [2, 8, 128], strides = [1, 1, 1]} : vector<2x8x1536xbf16> to vector<2x8x128xbf16>
    %85 = vector.extract_strided_slice %42 {offsets = [0, 0, 1280], sizes = [2, 8, 128], strides = [1, 1, 1]} : vector<2x8x1536xbf16> to vector<2x8x128xbf16>
    "tpu.trace_start"() <{level = 10 : i32, message = "bqd,bkd->bqk"}> : () -> ()
    %cst_30 = arith.constant dense<0.000000e+00> : vector<2x8x8xf32>
    %86 = tpu.matmul %83, %84, %cst_30 {dimension_numbers = #tpu.dot_dimension_numbers<[2], [2], [1], [1], [0, 0, 0, 1, 1, 1], [0], [0]>} : vector<2x8x128xbf16>, vector<2x8x128xbf16>, vector<2x8x8xf32> -> vector<2x8x8xf32>
    "tpu.trace_stop"() : () -> ()
    %87 = arith.addf %86, %48 : vector<2x8x8xf32>
    %cst_31 = arith.constant dense<0xFF800000> : vector<2x8xf32>
    %88 = vector.multi_reduction <maximumf>, %87, %cst_31 [2] : vector<2x8x8xf32> to vector<2x8xf32>
    %89 = vector.shape_cast %88 : vector<2x8xf32> to vector<2x8x1xf32>
    %90 = vector.broadcast %89 : vector<2x8x1xf32> to vector<2x8x8xf32>
    %91 = arith.subf %87, %90 : vector<2x8x8xf32>
    %92 = math.exp %91 : vector<2x8x8xf32>
    %cst_32 = arith.constant dense<0.000000e+00> : vector<2x8xf32>
    %93 = vector.multi_reduction <add>, %92, %cst_32 [2] : vector<2x8x8xf32> to vector<2x8xf32>
    %94 = vector.shape_cast %93 : vector<2x8xf32> to vector<2x8x1xf32>
    %95 = tpu.reciprocal %94 {approx = true} : vector<2x8x1xf32> -> vector<2x8x1xf32>
    %96 = vector.broadcast %95 : vector<2x8x1xf32> to vector<2x8x8xf32>
    %97 = arith.mulf %92, %96 : vector<2x8x8xf32>
    %98 = arith.truncf %97 : vector<2x8x8xf32> to vector<2x8x8xbf16>
    "tpu.trace_start"() <{level = 10 : i32, message = "bqk,bkd->bqd"}> : () -> ()
    %cst_33 = arith.constant dense<0.000000e+00> : vector<2x8x128xf32>
    %99 = tpu.matmul %98, %85, %cst_33 {dimension_numbers = #tpu.dot_dimension_numbers<[2], [1], [1], [2], [0, 0, 0, 1, 1, 2], [0], [0]>} : vector<2x8x8xbf16>, vector<2x8x128xbf16>, vector<2x8x128xf32> -> vector<2x8x128xf32>
    "tpu.trace_stop"() : () -> ()
    %100 = vector.extract_strided_slice %42 {offsets = [0, 0, 384], sizes = [2, 8, 128], strides = [1, 1, 1]} : vector<2x8x1536xbf16> to vector<2x8x128xbf16>
    %101 = vector.extract_strided_slice %42 {offsets = [0, 0, 896], sizes = [2, 8, 128], strides = [1, 1, 1]} : vector<2x8x1536xbf16> to vector<2x8x128xbf16>
    %102 = vector.extract_strided_slice %42 {offsets = [0, 0, 1408], sizes = [2, 8, 128], strides = [1, 1, 1]} : vector<2x8x1536xbf16> to vector<2x8x128xbf16>
    "tpu.trace_start"() <{level = 10 : i32, message = "bqd,bkd->bqk"}> : () -> ()
    %cst_34 = arith.constant dense<0.000000e+00> : vector<2x8x8xf32>
    %103 = tpu.matmul %100, %101, %cst_34 {dimension_numbers = #tpu.dot_dimension_numbers<[2], [2], [1], [1], [0, 0, 0, 1, 1, 1], [0], [0]>} : vector<2x8x128xbf16>, vector<2x8x128xbf16>, vector<2x8x8xf32> -> vector<2x8x8xf32>
    "tpu.trace_stop"() : () -> ()
    %104 = arith.addf %103, %48 : vector<2x8x8xf32>
    %cst_35 = arith.constant dense<0xFF800000> : vector<2x8xf32>
    %105 = vector.multi_reduction <maximumf>, %104, %cst_35 [2] : vector<2x8x8xf32> to vector<2x8xf32>
    %106 = vector.shape_cast %105 : vector<2x8xf32> to vector<2x8x1xf32>
    %107 = vector.broadcast %106 : vector<2x8x1xf32> to vector<2x8x8xf32>
    %108 = arith.subf %104, %107 : vector<2x8x8xf32>
    %109 = math.exp %108 : vector<2x8x8xf32>
    %cst_36 = arith.constant dense<0.000000e+00> : vector<2x8xf32>
    %110 = vector.multi_reduction <add>, %109, %cst_36 [2] : vector<2x8x8xf32> to vector<2x8xf32>
    %111 = vector.shape_cast %110 : vector<2x8xf32> to vector<2x8x1xf32>
    %112 = tpu.reciprocal %111 {approx = true} : vector<2x8x1xf32> -> vector<2x8x1xf32>
    %113 = vector.broadcast %112 : vector<2x8x1xf32> to vector<2x8x8xf32>
    %114 = arith.mulf %109, %113 : vector<2x8x8xf32>
    %115 = arith.truncf %114 : vector<2x8x8xf32> to vector<2x8x8xbf16>
    "tpu.trace_start"() <{level = 10 : i32, message = "bqk,bkd->bqd"}> : () -> ()
    %cst_37 = arith.constant dense<0.000000e+00> : vector<2x8x128xf32>
    %116 = tpu.matmul %115, %102, %cst_37 {dimension_numbers = #tpu.dot_dimension_numbers<[2], [1], [1], [2], [0, 0, 0, 1, 1, 2], [0], [0]>} : vector<2x8x8xbf16>, vector<2x8x128xbf16>, vector<2x8x128xf32> -> vector<2x8x128xf32>
    "tpu.trace_stop"() : () -> ()
    %117 = tpu.concatenate %65, %82, %99, %116 in 2 : vector<2x8x128xf32>, vector<2x8x128xf32>, vector<2x8x128xf32>, vector<2x8x128xf32> -> vector<2x8x512xf32>
    %118 = vector.shape_cast %117 : vector<2x8x512xf32> to vector<16x512xf32>
    %119 = arith.truncf %118 : vector<16x512xf32> to vector<16x512xbf16>
    %c0_38 = arith.constant 0 : index
    %c0_39 = arith.constant 0 : index
    %c0_40 = arith.constant 0 : index
    %120 = vector.load %arg7[%c0_38, %c0_39, %c0_40] : memref<1x512x128xbf16, #tpu.memory_space<vmem>>, vector<1x512x128xbf16>
    %121 = vector.shape_cast %120 : vector<1x512x128xbf16> to vector<512x128xbf16>
    %cst_41 = arith.constant dense<0.000000e+00> : vector<16x128xf32>
    %122 = tpu.matmul %119, %121, %cst_41 {dimension_numbers = #tpu.dot_dimension_numbers<[1], [0], [0], [1], [0, 0, 1, 1], [], []>} : vector<16x512xbf16>, vector<512x128xbf16>, vector<16x128xf32> -> vector<16x128xf32>
    %c0_42 = arith.constant 0 : index
    %c0_43 = arith.constant 0 : index
    %c0_44 = arith.constant 0 : index
    %123 = vector.load %arg8[%c0_42, %c0_43, %c0_44] : memref<1x1x128xf32, #tpu.memory_space<vmem>>, vector<1x1x128xf32>
    %124 = vector.shape_cast %123 : vector<1x1x128xf32> to vector<1x128xf32>
    %125 = vector.broadcast %124 : vector<1x128xf32> to vector<16x128xf32>
    %126 = arith.addf %122, %125 : vector<16x128xf32>
    %127 = arith.addf %6, %126 : vector<16x128xf32>
    %c0_45 = arith.constant 0 : index
    %c0_46 = arith.constant 0 : index
    %c0_47 = arith.constant 0 : index
    %128 = vector.load %arg9[%c0_45, %c0_46, %c0_47] : memref<1x1x128xf32, #tpu.memory_space<vmem>>, vector<1x1x128xf32>
    %129 = vector.shape_cast %128 : vector<1x1x128xf32> to vector<1x128xf32>
    %c0_48 = arith.constant 0 : index
    %c0_49 = arith.constant 0 : index
    %c0_50 = arith.constant 0 : index
    %130 = vector.load %arg10[%c0_48, %c0_49, %c0_50] : memref<1x1x128xf32, #tpu.memory_space<vmem>>, vector<1x1x128xf32>
    %131 = vector.shape_cast %130 : vector<1x1x128xf32> to vector<1x128xf32>
    %cst_51 = arith.constant dense<0.000000e+00> : vector<16xf32>
    %132 = vector.multi_reduction <add>, %127, %cst_51 [1] : vector<16x128xf32> to vector<16xf32>
    %133 = vector.shape_cast %132 : vector<16xf32> to vector<16x1xf32>
    %cst_52 = arith.constant 3.125000e-02 : f32
    %134 = vector.broadcast %cst_52 : f32 to vector<16x1xf32>
    %135 = arith.mulf %133, %134 : vector<16x1xf32>
    %136 = vector.broadcast %135 : vector<16x1xf32> to vector<16x128xf32>
    %137 = arith.subf %127, %136 : vector<16x128xf32>
    %cst_53 = arith.constant 0.000000e+00 : f32
    %138 = vector.broadcast %cst_53 : f32 to vector<16x128xf32>
    %139 = arith.select %5, %137, %138 : vector<16x128xi1>, vector<16x128xf32>
    %140 = arith.mulf %139, %139 : vector<16x128xf32>
    %cst_54 = arith.constant dense<0.000000e+00> : vector<16xf32>
    %141 = vector.multi_reduction <add>, %140, %cst_54 [1] : vector<16x128xf32> to vector<16xf32>
    %142 = vector.shape_cast %141 : vector<16xf32> to vector<16x1xf32>
    %cst_55 = arith.constant 3.125000e-02 : f32
    %143 = vector.broadcast %cst_55 : f32 to vector<16x1xf32>
    %144 = arith.mulf %142, %143 : vector<16x1xf32>
    %cst_56 = arith.constant 9.99999974E-6 : f32
    %145 = vector.broadcast %cst_56 : f32 to vector<16x1xf32>
    %146 = arith.addf %144, %145 : vector<16x1xf32>
    %147 = math.rsqrt %146 : vector<16x1xf32>
    %148 = vector.broadcast %147 : vector<16x1xf32> to vector<16x128xf32>
    %149 = arith.mulf %139, %148 : vector<16x128xf32>
    %150 = vector.broadcast %129 : vector<1x128xf32> to vector<16x128xf32>
    %151 = arith.mulf %149, %150 : vector<16x128xf32>
    %152 = vector.broadcast %131 : vector<1x128xf32> to vector<16x128xf32>
    %153 = arith.addf %151, %152 : vector<16x128xf32>
    %154 = arith.truncf %153 : vector<16x128xf32> to vector<16x128xbf16>
    %c0_57 = arith.constant 0 : index
    %c0_58 = arith.constant 0 : index
    %c0_59 = arith.constant 0 : index
    %155 = vector.load %arg11[%c0_57, %c0_58, %c0_59] : memref<1x128x128xbf16, #tpu.memory_space<vmem>>, vector<1x128x128xbf16>
    %156 = vector.shape_cast %155 : vector<1x128x128xbf16> to vector<128x128xbf16>
    %cst_60 = arith.constant dense<0.000000e+00> : vector<16x128xf32>
    %157 = tpu.matmul %154, %156, %cst_60 {dimension_numbers = #tpu.dot_dimension_numbers<[1], [0], [0], [1], [0, 0, 1, 1], [], []>} : vector<16x128xbf16>, vector<128x128xbf16>, vector<16x128xf32> -> vector<16x128xf32>
    %c0_61 = arith.constant 0 : index
    %c0_62 = arith.constant 0 : index
    %c0_63 = arith.constant 0 : index
    %158 = vector.load %arg12[%c0_61, %c0_62, %c0_63] : memref<1x1x128xf32, #tpu.memory_space<vmem>>, vector<1x1x128xf32>
    %159 = vector.shape_cast %158 : vector<1x1x128xf32> to vector<1x128xf32>
    %160 = vector.broadcast %159 : vector<1x128xf32> to vector<16x128xf32>
    %161 = arith.addf %157, %160 : vector<16x128xf32>
    %cst_64 = arith.constant -1.702000e+00 : f32
    %162 = vector.broadcast %cst_64 : f32 to vector<16x128xf32>
    %163 = arith.mulf %162, %161 : vector<16x128xf32>
    %164 = math.exp %163 : vector<16x128xf32>
    %cst_65 = arith.constant 1.000000e+00 : f32
    %165 = vector.broadcast %cst_65 : f32 to vector<16x128xf32>
    %166 = arith.addf %165, %164 : vector<16x128xf32>
    %167 = tpu.reciprocal %166 {approx = true} : vector<16x128xf32> -> vector<16x128xf32>
    %168 = arith.mulf %161, %167 : vector<16x128xf32>
    %169 = arith.truncf %168 : vector<16x128xf32> to vector<16x128xbf16>
    %c0_66 = arith.constant 0 : index
    %c0_67 = arith.constant 0 : index
    %c0_68 = arith.constant 0 : index
    %170 = vector.load %arg13[%c0_66, %c0_67, %c0_68] : memref<1x128x128xbf16, #tpu.memory_space<vmem>>, vector<1x128x128xbf16>
    %171 = vector.shape_cast %170 : vector<1x128x128xbf16> to vector<128x128xbf16>
    %cst_69 = arith.constant dense<0.000000e+00> : vector<16x128xf32>
    %172 = tpu.matmul %169, %171, %cst_69 {dimension_numbers = #tpu.dot_dimension_numbers<[1], [0], [0], [1], [0, 0, 1, 1], [], []>} : vector<16x128xbf16>, vector<128x128xbf16>, vector<16x128xf32> -> vector<16x128xf32>
    %c0_70 = arith.constant 0 : index
    %c0_71 = arith.constant 0 : index
    %c0_72 = arith.constant 0 : index
    %173 = vector.load %arg14[%c0_70, %c0_71, %c0_72] : memref<1x1x128xf32, #tpu.memory_space<vmem>>, vector<1x1x128xf32>
    %174 = vector.shape_cast %173 : vector<1x1x128xf32> to vector<1x128xf32>
    %175 = vector.broadcast %174 : vector<1x128xf32> to vector<16x128xf32>
    %176 = arith.addf %172, %175 : vector<16x128xf32>
    %177 = arith.addf %127, %176 : vector<16x128xf32>
    %c1_i32 = arith.constant 1 : i32
    %178 = arith.cmpi slt, %arg0, %c1_i32 : i32
    %179 = arith.extui %178 : i1 to i32
    %c0_i32_73 = arith.constant 0 : i32
    %180 = arith.cmpi ne, %179, %c0_i32_73 : i32
    scf.if %180 {
      %c0_76 = arith.constant 0 : index
      %c0_77 = arith.constant 0 : index
      %184 = vector.load %arg18[%c0_76, %c0_77] : memref<16x128xf32, #tpu.memory_space<vmem>>, vector<16x128xf32>
      tpu.vector_store %arg18[%c0_76, %c0_77], %177 {strides = array<i32>} : memref<16x128xf32, #tpu.memory_space<vmem>>, vector<16x128xf32>,
    } else {
    }
    %c1_i32_74 = arith.constant 1 : i32
    %181 = arith.cmpi eq, %arg0, %c1_i32_74 : i32
    %182 = arith.extui %181 : i1 to i32
    %c0_i32_75 = arith.constant 0 : i32
    %183 = arith.cmpi ne, %182, %c0_i32_75 : i32
    scf.if %183 {
      %c0_76 = arith.constant 0 : index
      %c0_77 = arith.constant 0 : index
      %184 = vector.load %arg2[%c0_76, %c0_77] : memref<2x8xi32, #tpu.memory_space<vmem>>, vector<2x8xi32>
      %cst_78 = arith.constant dense<-2147483648> : vector<2xi32>
      %185 = vector.multi_reduction <maxsi>, %184, %cst_78 [1] : vector<2x8xi32> to vector<2xi32>
      %186 = vector.shape_cast %185 : vector<2xi32> to vector<2x1xi32>
      %187 = tpu.iota {dimensions = array<i32: 1>} : vector<2x8xi32>
      %188 = vector.broadcast %186 : vector<2x1xi32> to vector<2x8xi32>
      %189 = arith.cmpi eq, %184, %188 : vector<2x8xi32>
      %c8_i32 = arith.constant 8 : i32
      %190 = vector.broadcast %c8_i32 : i32 to vector<2x8xi32>
      %191 = arith.select %189, %187, %190 : vector<2x8xi1>, vector<2x8xi32>
      %cst_79 = arith.constant dense<2147483647> : vector<2xi32>
      %192 = vector.multi_reduction <minsi>, %191, %cst_79 [1] : vector<2x8xi32> to vector<2xi32>
      %193 = vector.shape_cast %192 : vector<2xi32> to vector<2x1xi32>
      %194 = tpu.iota {dimensions = array<i32: 0>} : vector<2x1xi32>
      %c8_i32_80 = arith.constant 8 : i32
      %195 = vector.broadcast %c8_i32_80 : i32 to vector<2x1xi32>
      %196 = arith.muli %194, %195 : vector<2x1xi32>
      %197 = arith.addi %193, %196 : vector<2x1xi32>
      %198 = tpu.iota {dimensions = array<i32: 1>} : vector<2x16xi32>
      %199 = vector.broadcast %197 : vector<2x1xi32> to vector<2x16xi32>
      %200 = arith.cmpi eq, %198, %199 : vector<2x16xi32>
      %201 = arith.extui %200 : vector<2x16xi1> to vector<2x16xi32>
      %202 = arith.sitofp %201 : vector<2x16xi32> to vector<2x16xf32>
      %cst_81 = arith.constant dense<0.000000e+00> : vector<2x128xf32>
      %203 = tpu.matmul %202, %177, %cst_81 {dimension_numbers = #tpu.dot_dimension_numbers<[1], [0], [0], [1], [0, 0, 1, 1], [], []>} : vector<2x16xf32>, vector<16x128xf32>, vector<2x128xf32> -> vector<2x128xf32>
      %204 = arith.truncf %203 : vector<2x128xf32> to vector<2x128xbf16>
      %c0_82 = arith.constant 0 : index
      %c0_83 = arith.constant 0 : index
      %205 = vector.load %arg17[%c0_82, %c0_83] : memref<128x128xbf16, #tpu.memory_space<vmem>>, vector<128x128xbf16>
      %cst_84 = arith.constant dense<0.000000e+00> : vector<2x128xf32>
      %206 = tpu.matmul %204, %205, %cst_84 {dimension_numbers = #tpu.dot_dimension_numbers<[1], [0], [0], [1], [0, 0, 1, 1], [], []>} : vector<2x128xbf16>, vector<128x128xbf16>, vector<2x128xf32> -> vector<2x128xf32>
      %c0_85 = arith.constant 0 : index
      %c0_86 = arith.constant 0 : index
      %207 = vector.load %arg19[%c0_85, %c0_86] : memref<2x128xf32, #tpu.memory_space<vmem>>, vector<2x128xf32>
      tpu.vector_store %arg19[%c0_85, %c0_86], %206 {strides = array<i32>} : memref<2x128xf32, #tpu.memory_space<vmem>>, vector<2x128xf32>,
      %c0_87 = arith.constant 0 : index
      %c0_88 = arith.constant 0 : index
      %208 = vector.load %arg15[%c0_87, %c0_88] : memref<1x128xf32, #tpu.memory_space<vmem>>, vector<1x128xf32>
      %c0_89 = arith.constant 0 : index
      %c0_90 = arith.constant 0 : index
      %209 = vector.load %arg16[%c0_89, %c0_90] : memref<1x128xf32, #tpu.memory_space<vmem>>, vector<1x128xf32>
      %cst_91 = arith.constant dense<0.000000e+00> : vector<16xf32>
      %210 = vector.multi_reduction <add>, %177, %cst_91 [1] : vector<16x128xf32> to vector<16xf32>
      %211 = vector.shape_cast %210 : vector<16xf32> to vector<16x1xf32>
      %cst_92 = arith.constant 3.125000e-02 : f32
      %212 = vector.broadcast %cst_92 : f32 to vector<16x1xf32>
      %213 = arith.mulf %211, %212 : vector<16x1xf32>
      %214 = vector.broadcast %213 : vector<16x1xf32> to vector<16x128xf32>
      %215 = arith.subf %177, %214 : vector<16x128xf32>
      %cst_93 = arith.constant 0.000000e+00 : f32
      %216 = vector.broadcast %cst_93 : f32 to vector<16x128xf32>
      %217 = arith.select %5, %215, %216 : vector<16x128xi1>, vector<16x128xf32>
      %218 = arith.mulf %217, %217 : vector<16x128xf32>
      %cst_94 = arith.constant dense<0.000000e+00> : vector<16xf32>
      %219 = vector.multi_reduction <add>, %218, %cst_94 [1] : vector<16x128xf32> to vector<16xf32>
      %220 = vector.shape_cast %219 : vector<16xf32> to vector<16x1xf32>
      %cst_95 = arith.constant 3.125000e-02 : f32
      %221 = vector.broadcast %cst_95 : f32 to vector<16x1xf32>
      %222 = arith.mulf %220, %221 : vector<16x1xf32>
      %cst_96 = arith.constant 9.99999974E-6 : f32
      %223 = vector.broadcast %cst_96 : f32 to vector<16x1xf32>
      %224 = arith.addf %222, %223 : vector<16x1xf32>
      %225 = math.rsqrt %224 : vector<16x1xf32>
      %226 = vector.broadcast %225 : vector<16x1xf32> to vector<16x128xf32>
      %227 = arith.mulf %217, %226 : vector<16x128xf32>
      %228 = vector.broadcast %208 : vector<1x128xf32> to vector<16x128xf32>
      %229 = arith.mulf %227, %228 : vector<16x128xf32>
      %230 = vector.broadcast %209 : vector<1x128xf32> to vector<16x128xf32>
      %231 = arith.addf %229, %230 : vector<16x128xf32>
      %c0_97 = arith.constant 0 : index
      %c0_98 = arith.constant 0 : index
      %232 = vector.load %arg18[%c0_97, %c0_98] : memref<16x128xf32, #tpu.memory_space<vmem>>, vector<16x128xf32>
      tpu.vector_store %arg18[%c0_97, %c0_98], %231 {strides = array<i32>} : memref<16x128xf32, #tpu.memory_space<vmem>>, vector<16x128xf32>,
    } else {
    }
    return
  }
  func.func @transform_0(%arg0: i32) -> (i32, i32) {
    %c0_i32 = arith.constant 0 : i32
    %c0_i32_0 = arith.constant 0 : i32
    %c0_i32_1 = arith.constant 0 : i32
    return %c0_i32, %c0_i32_0 : i32, i32
  }
  func.func @transform_1(%arg0: i32) -> (i32, i32) {
    %c0_i32 = arith.constant 0 : i32
    %c0_i32_0 = arith.constant 0 : i32
    %c0_i32_1 = arith.constant 0 : i32
    return %c0_i32, %c0_i32_0 : i32, i32
  }
  func.func @transform_2(%arg0: i32) -> (i32, i32, i32) {
    %c0_i32 = arith.constant 0 : i32
    %c0_i32_0 = arith.constant 0 : i32
    %c0_i32_1 = arith.constant 0 : i32
    return %arg0, %c0_i32, %c0_i32_0 : i32, i32, i32
  }
  func.func @transform_3(%arg0: i32) -> (i32, i32, i32) {
    %c0_i32 = arith.constant 0 : i32
    %c0_i32_0 = arith.constant 0 : i32
    %c0_i32_1 = arith.constant 0 : i32
    return %arg0, %c0_i32, %c0_i32_0 : i32, i32, i32
  }
  func.func @transform_4(%arg0: i32) -> (i32, i32, i32) {
    %c0_i32 = arith.constant 0 : i32
    %c0_i32_0 = arith.constant 0 : i32
    %c0_i32_1 = arith.constant 0 : i32
    return %arg0, %c0_i32, %c0_i32_0 : i32, i32, i32
  }
  func.func @transform_5(%arg0: i32) -> (i32, i32, i32) {
    %c0_i32 = arith.constant 0 : i32
    %c0_i32_0 = arith.constant 0 : i32
    %c0_i32_1 = arith.constant 0 : i32
    return %arg0, %c0_i32, %c0_i32_0 : i32, i32, i32
  }
  func.func @transform_6(%arg0: i32) -> (i32, i32, i32) {
    %c0_i32 = arith.constant 0 : i32
    %c0_i32_0 = arith.constant 0 : i32
    %c0_i32_1 = arith.constant 0 : i32
    return %arg0, %c0_i32, %c0_i32_0 : i32, i32, i32
  }
  func.func @transform_7(%arg0: i32) -> (i32, i32, i32) {
    %c0_i32 = arith.constant 0 : i32
    %c0_i32_0 = arith.constant 0 : i32
    %c0_i32_1 = arith.constant 0 : i32
    return %arg0, %c0_i32, %c0_i32_0 : i32, i32, i32
  }
  func.func @transform_8(%arg0: i32) -> (i32, i32, i32) {
    %c0_i32 = arith.constant 0 : i32
    %c0_i32_0 = arith.constant 0 : i32
    %c0_i32_1 = arith.constant 0 : i32
    return %arg0, %c0_i32, %c0_i32_0 : i32, i32, i32
  }
  func.func @transform_9(%arg0: i32) -> (i32, i32, i32) {
    %c0_i32 = arith.constant 0 : i32
    %c0_i32_0 = arith.constant 0 : i32
    %c0_i32_1 = arith.constant 0 : i32
    return %arg0, %c0_i32, %c0_i32_0 : i32, i32, i32
  }
  func.func @transform_10(%arg0: i32) -> (i32, i32, i32) {
    %c0_i32 = arith.constant 0 : i32
    %c0_i32_0 = arith.constant 0 : i32
    %c0_i32_1 = arith.constant 0 : i32
    return %arg0, %c0_i32, %c0_i32_0 : i32, i32, i32
  }
  func.func @transform_11(%arg0: i32) -> (i32, i32, i32) {
    %c0_i32 = arith.constant 0 : i32
    %c0_i32_0 = arith.constant 0 : i32
    %c0_i32_1 = arith.constant 0 : i32
    return %arg0, %c0_i32, %c0_i32_0 : i32, i32, i32
  }
  func.func @transform_12(%arg0: i32) -> (i32, i32, i32) {
    %c0_i32 = arith.constant 0 : i32
    %c0_i32_0 = arith.constant 0 : i32
    %c0_i32_1 = arith.constant 0 : i32
    return %arg0, %c0_i32, %c0_i32_0 : i32, i32, i32
  }
  func.func @transform_13(%arg0: i32) -> (i32, i32, i32) {
    %c0_i32 = arith.constant 0 : i32
    %c0_i32_0 = arith.constant 0 : i32
    %c0_i32_1 = arith.constant 0 : i32
    return %arg0, %c0_i32, %c0_i32_0 : i32, i32, i32
  }
  func.func @transform_14(%arg0: i32) -> (i32, i32) {
    %c0_i32 = arith.constant 0 : i32
    %c0_i32_0 = arith.constant 0 : i32
    %c0_i32_1 = arith.constant 0 : i32
    return %c0_i32, %c0_i32_0 : i32, i32
  }
  func.func @transform_15(%arg0: i32) -> (i32, i32) {
    %c0_i32 = arith.constant 0 : i32
    %c0_i32_0 = arith.constant 0 : i32
    %c0_i32_1 = arith.constant 0 : i32
    return %c0_i32, %c0_i32_0 : i32, i32
  }
  func.func @transform_16(%arg0: i32) -> (i32, i32) {
    %c0_i32 = arith.constant 0 : i32
    %c0_i32_0 = arith.constant 0 : i32
    %c0_i32_1 = arith.constant 0 : i32
    return %c0_i32, %c0_i32_0 : i32, i32
  }
  func.func @transform_17(%arg0: i32) -> (i32, i32) {
    %c0_i32 = arith.constant 0 : i32
    %c0_i32_0 = arith.constant 0 : i32
    %c0_i32_1 = arith.constant 0 : i32
    return %c0_i32, %c0_i32_0 : i32, i32
  }
  func.func @transform_18(%arg0: i32) -> (i32, i32) {
    %c0_i32 = arith.constant 0 : i32
    %c0_i32_0 = arith.constant 0 : i32
    %c0_i32_1 = arith.constant 0 : i32
    return %c0_i32, %c0_i32_0 : i32, i32
  }
}

</mosaic_0001>

<bundles_post_ra>
// kernel: tpu_custom_call.1
= control target key start
LH: loop header
LB: loop body
LE: loop exit
PB: predicated region body
PF: predicated region fallthrough
CT: control target
= control target key end

     0   :  { %s6044_s0 = inlined_call_operand.hbm [shape: f32[16,128], index: 0, kind: input, shape index: {}]   ;;  %s6045_s1 = inlined_call_operand.vmem [shape: s32[2,8], index: 1, kind: input, shape index: {}]   ;;  %s6046_s2 = inlined_call_operand.vmem [shape: f32[2,1,128], index: 2, kind: input, shape index: {}]   ;;  %s6047_s3 = inlined_call_operand.vmem [shape: f32[2,1,128], index: 3, kind: input, shape index: {}]   ;;  %s6048_s4 = inlined_call_operand.hbm [shape: bf16[2,128,1536], index: 4, kind: input, shape index: {}]   ;;  %s6049_s5 = inlined_call_operand.hbm [shape: f32[2,1,1536], index: 5, kind: input, shape index: {}]   ;;  %s6050_s6 = inlined_call_operand.hbm [shape: bf16[2,512,128], index: 6, kind: input, shape index: {}]   ;;  %s6051_s7 = inlined_call_operand.vmem [shape: f32[2,1,128], index: 7, kind: input, shape index: {}]   ;;  %s6052_s8 = inlined_call_operand.vmem [shape: f32[2,1,128], index: 8, kind: input, shape index: {}]   ;;  %s6053_s9 = inlined_call_operand.vmem [shape: f32[2,1,128], index: 9, kind: input, shape index: {}]   ;;  %s6054_s10 = inlined_call_operand.hbm [shape: bf16[2,128,128], index: 10, kind: input, shape index: {}]   ;;  %s6055_s11 = inlined_call_operand.vmem [shape: f32[2,1,128], index: 11, kind: input, shape index: {}]   ;;  %s6056_s12 = inlined_call_operand.hbm [shape: bf16[2,128,128], index: 12, kind: input, shape index: {}]   ;;  %s6057_s13 = inlined_call_operand.vmem [shape: f32[2,1,128], index: 13, kind: input, shape index: {}]   ;;  %s6058_s14 = inlined_call_operand.vmem [shape: f32[1,128], index: 14, kind: input, shape index: {}]   ;;  %s6059_s15 = inlined_call_operand.vmem [shape: f32[1,128], index: 15, kind: input, shape index: {}]   ;;  %s6060_s16 = inlined_call_operand.hbm [shape: bf16[128,128], index: 16, kind: input, shape index: {}]   ;;  %s6061_s17 = inlined_call_operand.hbm [shape: f32[16,128], index: 17, kind: output, shape index: {0}]   ;;  %s6062_s18 = inlined_call_operand.hbm [shape: f32[2,128], index: 18, kind: output, shape index: {1}]  }
   0x1   :  { %6086 = sst [smem:[#allocation27_spill]] %s6044_s0 }
   0x2   :  { %6087 = sst [smem:[#allocation28_spill]] %s6045_s1 }
   0x3   :  { %6088 = sst [smem:[#allocation29_spill]] %s6046_s2 }
   0x4   :  { %6089 = sst [smem:[#allocation30_spill]] %s6048_s4 }
   0x5   :  { %6090 = sst [smem:[#allocation31_spill]] %s6049_s5 }
   0x6   :  { %6091 = sst [smem:[#allocation32_spill]] %s6050_s6 }
   0x7   :  { %6092 = sst [smem:[#allocation33_spill]] %s6051_s7 }
   0x8   :  { %6093 = sst [smem:[#allocation34_spill]] %s6052_s8 }
   0x9   :  { %6094 = sst [smem:[#allocation35_spill]] %s6053_s9 }
   0xa   :  { %6095 = sst [smem:[#allocation36_spill]] %s6054_s10 }
   0xb   :  { %6096 = sst [smem:[#allocation37_spill]] %s6055_s11 }
   0xc   :  { %6097 = sst [smem:[#allocation38_spill]] %s6057_s13 }
   0xd   :  { %6098 = sst [smem:[#allocation39_spill]] %s6058_s14 }
   0xe   :  { %6099 = sst [smem:[#allocation40_spill]] %s6059_s15 }
   0xf   :  { %6100 = sst [smem:[#allocation41_spill]] %s6060_s16 }
  0x10   :  { %6101 = sst [smem:[#allocation42_spill]] %s6061_s17 }
  0x11   :  { %6102 = sst [smem:[#allocation43_spill]] %s6062_s18 }
  0x12   :  { %24 = vsyncpa [#allocation3], 0 }
  0x13   :  { %25 = vsyncpa [#allocation6], 0 }
  0x14   :  { %27 = vsyncpa [#allocation6 + $0x1], 0 }
  0x15   :  { %28 = vsyncpa [#allocation9], 0 }
  0x16   :  { %30 = vsyncpa [#allocation9 + $0x1], 0 }
  0x17   :  { %31 = vsyncpa [#allocation12], 0 }
  0x18   :  { %33 = vsyncpa [#allocation12 + $0x1], 0 }
  0x19   :  { %34 = vsyncpa [#allocation4], 0 }
  0x1a   :  { %35 = vsyncpa [#allocation16], 0  ;;  %s5157_s27 = smov 0   ;;  %s5159_s28 = smov 0  }
  0x1b   :  { %s5161_s29 = smov 0   ;;  %s5163_s30 = smov 0  }
  0x1c LB: > { %6103 = sst [smem:[#allocation24_spill]] %s5032_s29  ;;  %s5176_s0 = sadd.s32 4294967295, %s5036_s30   ;;  %s5036_s30 = sphi %s5163_s30, %s6154_s30   ;;  %s5032_s29 = sphi %s5161_s29, %s6156_s29   ;;  %s5028_s28 = sphi %s5159_s28, %s6158_s28   ;;  %s5024_s27 = sphi %s5157_s27, %s6157_s27  }
  0x1d   : > { %s5179_s19 = sadd.s32 1, %s5036_s30   ;;  %s142_s20 = sadd.s32 1, %s5032_s29 }
  0x1e   : > { %6104 = sst [smem:[#allocation25_spill]] %s5179_s19  ;;  %s139_s1 = ssub.s32 %s5036_s30, %s5179_s19 }
  0x1f   : > { %p140_p0 = scmp.eq.s32.totalorder %s139_s1, 0  ;;  %p149_p1 = scmp.ne.s32.totalorder %s5032_s29, %s5028_s28 }
  0x20   : > { %p150_p2 = scmp.eq.s32.totalorder %s5036_s30, 0  ;;  %p155_p3 = scmp.ne.s32.totalorder %s5028_s28, %s5024_s27 }
  0x21   : > { %s5189_s21 = scalar_select %p140_p0, %s5032_s29, %s142_s20  }
  0x22   : > { %p5191_p4 = por %p150_p2, %p149_p1  ;;  %p6069_p5 = scmp.eq.s32.totalorder %s5176_s0, 0 }
  0x23   : > { %6105 = sst [smem:[#allocation26_spill]] %s5189_s21  ;;  %p3851_p6 = scmp.ge.s32.totalorder %s5036_s30, 1 }
  0x24   : > { %s6106_s22 = scalar_select %p5191_p4, 1, 0 }
  0x25   : > { %p505_p7 = scmp.lt.s32.totalorder %s5036_s30, 3  ;;  %p5200_p8 = por %p6069_p5, %p155_p3 }
  0x26   : > { %s5038_s24 = smov [#allocation13]   ;;  %s5219_s27 = sand.u32 1, %s5036_s30  }
  0x27   : > { %s6107_s2 = scalar_select %p5200_p8, 1, 0 }
  0x28   : > { %p5205_p10 = pnand %p3851_p6, %p505_p7  ;;  %s539_s25 = sshll.u32 %s5038_s24, 4  ;;  %s540_s25 = int_to_ptr.vmem [resolvable:$true] %s539_s25 }
  0x29   : > { %s5222_s1 = sand.u32 1, %s5032_s29   ;;  %s6110_s16 = sld [smem:[#allocation41_spill]] }
  0x2a   : > { %s6108_s23 = scalar_select %p5205_p10, 1, 0 }
  0x2b   : > { %p4383_p11 = pneg %p5205_p10 }
  0x2d   : > { %p5213_p12 = pnand %p4383_p11, %p6069_p5 }
  0x2f   : > { %s6109_s26 = scalar_select %p5213_p12, 1, 0 }
  0x30   : > { %s4720_s19 = scalar_lea.hbm %s6110_s16, 1024  ;;  %p6076_p1 = pneg %p5213_p12 }
  0x31   : > { %p4721_p0 = scmp.ne.s32.totalorder %s6110_s16, %s4720_s19  ;;  %p4727_p6 = scmp.lt.u32.totalorder %s4720_s19, %s6110_s16 }
  0x33   : > { %p4723_p2 = pnand %p6076_p1, %p4721_p0 }
  0x35   : > { %p4724_p3 = pneg %p4723_p2 }
  0x37   : > { %p4729_p7 = pnand %p4727_p6, %p4724_p3 }
  0x39   : > { %4732 = shalt.err (!%p4729_p7)
}
  0x3a   : > { %s4733_s29 = scalar_lea.vmem %s540_s25, 1024  ;;  %p4741_p13 = scmp.lt.s32.totalorder %s540_s25, %s540_s25 }
  0x3b   : > { %p4734_p11 = scmp.ne.s32.totalorder %s540_s25, %s4733_s29  ;;  %p4742_p8 = scmp.lt.s32.totalorder %s4733_s29, %s4733_s29 }
  0x3d   : > { %p4736_p9 = pnand %p4734_p11, %p6076_p1  ;;  %p4743_p10 = por %p4742_p8, %p4741_p13 }
  0x3f   : > { %p4737_p5 = pneg %p4736_p9 }
  0x41   : > { %p4744_p4 = pnand %p4743_p10, %p4737_p5 }
  0x43   : > { %4747 = shalt.err (!%p4744_p4)
}
  0x44   : > { %s6072_s18 = smov 64   ;;  %s6074_s15 = smov 4  }
  0x45   : > { %4389 = dma.hbm_to_vmem [thread:$0]  (!%p5213_p12), %s6110_s16, 1024, %s540_s25, [#allocation12], %s6072_s18, %s6072_s18, %s6074_s15  }
  0x46   : > { %s4351_s29 = smul.u32 768, %s5222_s1  ;;  %p6111_p8 = scmp.ne.s32.totalorder %s6106_s22, 0 }
  0x47   : > { %p6112_p5 = scmp.lt.s32.totalorder %s5036_s30, 2  ;;  %s4352_s20 = smul.u32 12288, %s5036_s30 }
  0x48   : > { %s6114_s4 = sld [smem:[#allocation30_spill]]  ;;  %s569_s17 = scalar_lea.vmem [#allocation5], %s4351_s29 }
  0x49   : > { %p5254_p4 = pnand %p6112_p5, %p6111_p8  ;;  %s576_s25 = sshll.u32 %s569_s17, 4  ;;  %s5264_s25 = int_to_ptr.vmem [resolvable:$true] %s576_s25 }
  0x4a   : > { %s6079_s22 = scalar_lea.sflag [#allocation6], %s5219_s27 }
  0x4b   : > { %s6113_s21 = scalar_select %p5254_p4, 1, 0 }
  0x4c   : > { %p5271_p10 = pneg %p5254_p4 }
  0x4e   : > { %s5262_s13 = scalar_lea.hbm %s6114_s4, %s4352_s20  ;;  %s4753_s24 = scalar_lea.hbm %s6114_s4, 24576 }
  0x4f   : > { %s4748_s19 = scalar_lea.hbm %s5262_s13, 12288  ;;  %p4754_p2 = scmp.lt.u32.totalorder %s5262_s13, %s6114_s4 }
  0x50   : > { %p4749_p9 = scmp.ne.s32.totalorder %s5262_s13, %s4748_s19  ;;  %p4755_p3 = scmp.lt.u32.totalorder %s4753_s24, %s4748_s19 }
  0x51   : > { %s6115_s18 = scalar_select %p5271_p10, 1, 0 }
  0x52   : > { %p4751_p13 = pnand %p5271_p10, %p4749_p9  ;;  %p4756_p6 = por %p4755_p3, %p4754_p2 }
  0x53   : > { %p4757_p7 = scmp.lt.u32.totalorder %s4748_s19, %s5262_s13 }
  0x54   : > { %p4752_p0 = pneg %p4751_p13 }
  0x55   : > { %p4758_p11 = por %p4757_p7, %p4756_p6 }
  0x57   : > { %p4759_p8 = pnand %p4758_p11, %p4752_p0 }
  0x59   : > { %4762 = shalt.err (!%p4759_p8)
}
  0x5a   : > { %s4763_s15 = scalar_lea.vmem %s5264_s25, 12288  ;;  %s5041_s14 = smov [#allocation5]  }
  0x5b   : > { %p4764_p5 = scmp.ne.s32.totalorder %s5264_s25, %s4763_s15  ;;  %s4768_s20 = sshll.u32 %s5041_s14, 4  ;;  %s4769_s20 = int_to_ptr.vmem [resolvable:$false] %s4768_s20 }
  0x5c   : > { %s4770_s29 = scalar_lea.vmem %s4769_s20, 24576  ;;  %p4771_p1 = scmp.lt.s32.totalorder %s5264_s25, %s4769_s20 }
  0x5d   : > { %p4766_p9 = pnand %p4764_p5, %p5271_p10  ;;  %p4772_p12 = scmp.lt.s32.totalorder %s4770_s29, %s4763_s15 }
  0x5f   : > { %p4767_p13 = pneg %p4766_p9  ;;  %p4773_p2 = por %p4772_p12, %p4771_p1 }
  0x61   : > { %p4774_p3 = pnand %p4773_p2, %p4767_p13 }
  0x63   : > { %4777 = shalt.err (!%p4774_p3)
}
  0x64   : > { %s5042_s19 = smov 768   ;;  %s5043_s24 = smov 48  }
  0x65   : > { %4393 = dma.hbm_to_vmem [thread:$0]  (!%p5254_p4), %s5262_s13, 12288, %s5264_s25, %s6079_s22, %s5042_s19, %s5042_s19, %s5043_s24  }
  0x66   : > { %s3857_s17 = sshll.u32 %s5222_s1, 8  ;;  %s4064_s14 = sshll.u32 %s5036_s30, 12 }
  0x67   : > { %s6116_s6 = sld [smem:[#allocation32_spill]]  ;;  %s609_s4 = scalar_lea.vmem [#allocation8], %s3857_s17 }
  0x68   : > { %s616_s16 = sshll.u32 %s609_s4, 4  ;;  %s6084_s11 = scalar_lea.sflag [#allocation9], %s5219_s27  ;;  %s5303_s16 = int_to_ptr.vmem [resolvable:$true] %s616_s16 }
  0x6d   : > { %s5301_s29 = scalar_lea.hbm %s6116_s6, %s4064_s14  ;;  %s4783_s19 = scalar_lea.hbm %s6116_s6, 8192 }
  0x6e   : > { %s4778_s9 = scalar_lea.hbm %s5301_s29, 4096  ;;  %p4784_p6 = scmp.lt.u32.totalorder %s5301_s29, %s6116_s6 }
  0x6f   : > { %p4779_p12 = scmp.ne.s32.totalorder %s5301_s29, %s4778_s9  ;;  %p4785_p7 = scmp.lt.u32.totalorder %s4783_s19, %s4778_s9 }
  0x70   : > { %p4787_p8 = scmp.lt.u32.totalorder %s4778_s9, %s5301_s29 }
  0x71   : > { %p4781_p1 = pnand %p4779_p12, %p5271_p10  ;;  %p4786_p11 = por %p4785_p7, %p4784_p6 }
  0x73   : > { %p4782_p0 = pneg %p4781_p1  ;;  %p4788_p5 = por %p4787_p8, %p4786_p11 }
  0x75   : > { %p4789_p9 = pnand %p4788_p5, %p4782_p0 }
  0x77   : > { %4792 = shalt.err (!%p4789_p9)
}
  0x78   : > { %s4793_s4 = scalar_lea.vmem %s5303_s16, 4096  ;;  %s5044_s17 = smov [#allocation8]  }
  0x79   : > { %p4794_p13 = scmp.ne.s32.totalorder %s5303_s16, %s4793_s4  ;;  %s4798_s20 = sshll.u32 %s5044_s17, 4  ;;  %s4799_s20 = int_to_ptr.vmem [resolvable:$false] %s4798_s20 }
  0x7a   : > { %s4800_s15 = scalar_lea.vmem %s4799_s20, 8192  ;;  %p4801_p12 = scmp.lt.s32.totalorder %s5303_s16, %s4799_s20 }
  0x7b   : > { %p4796_p2 = pnand %p4794_p13, %p5271_p10  ;;  %p4802_p1 = scmp.lt.s32.totalorder %s4800_s15, %s4793_s4 }
  0x7d   : > { %p4797_p3 = pneg %p4796_p2  ;;  %p4803_p6 = por %p4802_p1, %p4801_p12 }
  0x7f   : > { %p4804_p7 = pnand %p4803_p6, %p4797_p3 }
  0x81   : > { %4807 = shalt.err (!%p4804_p7)
}
  0x82   : > { %s6117_s9 = smov 4   ;;  %s6118_s13 = smov 64  }
  0x83   : > { %4399 = dma.hbm_to_vmem [thread:$0]  (!%p5254_p4), %s5301_s29, 4096, %s5303_s16, %s6084_s11, %s6118_s13, %s6118_s13, %s6117_s9  }
  0x84   : > { %s5045_s25 = smov [#allocation2]   ;;  %s6119_s4 = sld [smem:[#allocation27_spill]] }
  0x85   : > { %s517_s19 = sshll.u32 %s5045_s25, 4  ;;  %p6120_p11 = scmp.ne.s32.totalorder %s6109_s26, 0  ;;  %s518_s19 = int_to_ptr.vmem [resolvable:$true] %s517_s19 }
  0x87   : > { %p6121_p8 = pneg %p6120_p11 }
  0x8a   : > { %s4808_s17 = scalar_lea.hbm %s6119_s4, 256 }
  0x8b   : > { %p4809_p0 = scmp.ne.s32.totalorder %s6119_s4, %s4808_s17  ;;  %p4815_p13 = scmp.lt.u32.totalorder %s4808_s17, %s6119_s4 }
  0x8d   : > { %p4811_p5 = pnand %p4809_p0, %p6121_p8 }
  0x8f   : > { %p4812_p9 = pneg %p4811_p5 }
  0x91   : > { %p4817_p2 = pnand %p4815_p13, %p4812_p9 }
  0x93   : > { %4820 = shalt.err (!%p4817_p2)
}
  0x94   : > { %s4821_s16 = scalar_lea.vmem %s518_s19, 256  ;;  %p6122_p12 = pmov %p6121_p8 }
  0x95   : > { %p4822_p3 = scmp.ne.s32.totalorder %s518_s19, %s4821_s16  ;;  %p4829_p7 = scmp.lt.s32.totalorder %s518_s19, %s518_s19 }
  0x96   : > { %p4830_p4 = scmp.lt.s32.totalorder %s4821_s16, %s4821_s16 }
  0x97   : > { %p4824_p1 = pnand %p4822_p3, %p6122_p12 }
  0x98   : > { %p4831_p10 = por %p4830_p4, %p4829_p7 }
  0x99   : > { %p4825_p6 = pneg %p4824_p1 }
  0x9b   : > { %p4832_p0 = pnand %p4831_p10, %p4825_p6 }
  0x9d   : > { %4835 = shalt.err (!%p4832_p0)
}
  0x9e   : > { %s5046_s29 = smov 128   ;;  %s5047_s6 = smov 8  }
  0x9f   : > { %4386 = dma.hbm_to_vmem [thread:$0]  (!%p6120_p11), %s6119_s4, 256, %s518_s19, [#allocation3], %s5046_s29, %s5046_s29, %s5047_s6  }
  0xa0   : > { %s4353_s24 = smul.u32 12, %s5222_s1  ;;  %s3860_s14 = sshll.u32 %s5222_s1, 6 }
  0xa1   : > { %s4354_s17 = smul.u32 192, %s5036_s30  ;;  %s4065_s20 = sshll.u32 %s5036_s30, 10 }
  0xa2   : > { %s6123_s5 = sld [smem:[#allocation31_spill]]  ;;  %s590_s8 = scalar_lea.vmem [#allocation7], %s4353_s24 }
  0xa3   : > { %s598_s7 = sshll.u32 %s590_s8, 4  ;;  %s6124_s10 = sld [smem:[#allocation36_spill]]  ;;  %s599_s7 = int_to_ptr.vmem [resolvable:$true] %s598_s7 }
  0xa4   : > { %p6125_p10 = scmp.ne.s32.totalorder %s6115_s18, 0 }
  0xa8   : > { %s5359_s11 = scalar_lea.hbm %s6123_s5, %s4354_s17  ;;  %s4841_s17 = scalar_lea.hbm %s6123_s5, 384 }
  0xa9   : > { %s5366_s19 = scalar_lea.hbm %s6124_s10, %s4065_s20  ;;  %s4836_s29 = scalar_lea.hbm %s5359_s11, 192 }
  0xaa   : > { %p4837_p4 = scmp.ne.s32.totalorder %s5359_s11, %s4836_s29  ;;  %p4842_p5 = scmp.lt.u32.totalorder %s5359_s11, %s6123_s5 }
  0xab   : > { %p4843_p9 = scmp.lt.u32.totalorder %s4841_s17, %s4836_s29  ;;  %p4845_p2 = scmp.lt.u32.totalorder %s4836_s29, %s5359_s11 }
  0xac   : > { %p4839_p11 = pnand %p4837_p4, %p6125_p10 }
  0xad   : > { %p4844_p13 = por %p4843_p9, %p4842_p5 }
  0xae   : > { %p4840_p8 = pneg %p4839_p11 }
  0xaf   : > { %p4846_p3 = por %p4845_p2, %p4844_p13 }
  0xb1   : > { %p4847_p12 = pnand %p4846_p3, %p4840_p8 }
  0xb3   : > { %4850 = shalt.err (!%p4847_p12)
}
  0xb4   : > { %s4851_s8 = scalar_lea.vmem %s599_s7, 192  ;;  %s5048_s24 = smov [#allocation7]  }
  0xb5   : > { %p4852_p1 = scmp.ne.s32.totalorder %s599_s7, %s4851_s8  ;;  %s4856_s26 = sshll.u32 %s5048_s24, 4  ;;  %s4857_s26 = int_to_ptr.vmem [resolvable:$false] %s4856_s26 }
  0xb6   : > { %s4858_s22 = scalar_lea.vmem %s4857_s26, 384  ;;  %p4859_p0 = scmp.lt.s32.totalorder %s599_s7, %s4857_s26 }
  0xb7   : > { %p4854_p6 = pnand %p4852_p1, %p6125_p10  ;;  %p4860_p4 = scmp.lt.s32.totalorder %s4858_s22, %s4851_s8 }
  0xb9   : > { %p4855_p7 = pneg %p4854_p6  ;;  %p4861_p11 = por %p4860_p4, %p4859_p0 }
  0xbb   : > { %p4862_p5 = pnand %p4861_p11, %p4855_p7 }
  0xbd   : > { %4865 = shalt.err (!%p4862_p5)
}
  0xbe   : > { %p6126_p9 = scmp.ne.s32.totalorder %s6113_s21, 0  ;;  %s6127_s29 = scalar_lea.sflag [#allocation6], %s5219_s27 }
  0xbf   : > { %s648_s6 = scalar_lea.vmem [#allocation10], %s3860_s14  ;;  %s4866_s17 = scalar_lea.hbm %s5366_s19, 1024 }
  0xc0   : > { %4396 = dma.hbm_to_vmem [thread:$0]  (!%p6126_p9), %s5359_s11, 192, %s599_s7, %s6127_s29  }
  0xc1   : > { %s655_s25 = sshll.u32 %s648_s6, 4  ;;  %p4867_p8 = scmp.ne.s32.totalorder %s5366_s19, %s4866_s17  ;;  %s5389_s25 = int_to_ptr.vmem [resolvable:$true] %s655_s25 }
  0xc2   : > { %s4871_s8 = scalar_lea.hbm %s6124_s10, 2048  ;;  %p4872_p3 = scmp.lt.u32.totalorder %s5366_s19, %s6124_s10 }
  0xc3   : > { %p4869_p13 = pnand %p4867_p8, %p6125_p10  ;;  %p4873_p12 = scmp.lt.u32.totalorder %s4871_s8, %s4866_s17 }
  0xc4   : > { %p4875_p6 = scmp.lt.u32.totalorder %s4866_s17, %s5366_s19 }
  0xc5   : > { %p4870_p2 = pneg %p4869_p13  ;;  %p4874_p1 = por %p4873_p12, %p4872_p3 }
  0xc7   : > { %p4876_p7 = por %p4875_p6, %p4874_p1 }
  0xc9   : > { %p4877_p0 = pnand %p4876_p7, %p4870_p2 }
  0xcb   : > { %4880 = shalt.err (!%p4877_p0)
}
  0xcc   : > { %s4881_s7 = scalar_lea.vmem %s5389_s25, 1024  ;;  %s5049_s11 = smov [#allocation10]  }
  0xcd   : > { %p4882_p4 = scmp.ne.s32.totalorder %s5389_s25, %s4881_s7  ;;  %s4886_s22 = sshll.u32 %s5049_s11, 4  ;;  %s4887_s22 = int_to_ptr.vmem [resolvable:$false] %s4886_s22 }
  0xce   : > { %s4888_s29 = scalar_lea.vmem %s4887_s22, 2048  ;;  %p4889_p8 = scmp.lt.s32.totalorder %s5389_s25, %s4887_s22 }
  0xcf   : > { %p4884_p11 = pnand %p4882_p4, %p6125_p10  ;;  %p4890_p13 = scmp.lt.s32.totalorder %s4888_s29, %s4881_s7 }
  0xd1   : > { %p4885_p5 = pneg %p4884_p11  ;;  %p4891_p3 = por %p4890_p13, %p4889_p8 }
  0xd3   : > { %p4892_p12 = pnand %p4891_p3, %p4885_p5 }
  0xd5   : > { %4895 = shalt.err (!%p4892_p12)
}
  0xd6   : > { %s6128_s6 = scalar_lea.sflag [#allocation9], %s5219_s27  ;;  %s5422_s16 = scalar_lea.hbm %s6056_s12, %s4065_s20 }
  0xd7   : > { %4402 = dma.hbm_to_vmem [thread:$0]  (!%p6126_p9), %s5366_s19, 1024, %s5389_s25, %s6128_s6, %s6118_s13, %s6118_s13, %s6117_s9  }
  0xd8   : > { %s675_s8 = scalar_lea.vmem [#allocation11], %s3860_s14  ;;  %s672_s26 = scalar_lea.sflag [#allocation12], %s5219_s27 }
  0xd9   : > { %s682_s24 = sshll.u32 %s675_s8, 4  ;;  %s4896_s7 = scalar_lea.hbm %s5422_s16, 1024  ;;  %s5426_s24 = int_to_ptr.vmem [resolvable:$true] %s682_s24 }
  0xda   : > { %p4897_p2 = scmp.ne.s32.totalorder %s5422_s16, %s4896_s7  ;;  %s4901_s20 = scalar_lea.hbm %s6056_s12, 2048 }
  0xdb   : > { %p4902_p7 = scmp.lt.u32.totalorder %s5422_s16, %s6056_s12  ;;  %p4903_p0 = scmp.lt.u32.totalorder %s4901_s20, %s4896_s7 }
  0xdc   : > { %p4899_p1 = pnand %p4897_p2, %p6125_p10  ;;  %p4905_p11 = scmp.lt.u32.totalorder %s4896_s7, %s5422_s16 }
  0xdd   : > { %p4904_p4 = por %p4903_p0, %p4902_p7 }
  0xde   : > { %p4900_p6 = pneg %p4899_p1 }
  0xdf   : > { %p4906_p5 = por %p4905_p11, %p4904_p4 }
  0xe1   : > { %p4907_p8 = pnand %p4906_p5, %p4900_p6 }
  0xe3   : > { %4910 = shalt.err (!%p4907_p8)
}
  0xe4   : > { %s4911_s14 = scalar_lea.vmem %s5426_s24, 1024  ;;  %s5050_s11 = smov [#allocation11]  }
  0xe5   : > { %p4912_p13 = scmp.ne.s32.totalorder %s5426_s24, %s4911_s14  ;;  %s4916_s22 = sshll.u32 %s5050_s11, 4  ;;  %s4917_s22 = int_to_ptr.vmem [resolvable:$false] %s4916_s22 }
  0xe6   : > { %s4918_s29 = scalar_lea.vmem %s4917_s22, 2048  ;;  %p4919_p2 = scmp.lt.s32.totalorder %s5426_s24, %s4917_s22 }
  0xe7   : > { %p4914_p3 = pnand %p4912_p13, %p6125_p10  ;;  %p4920_p1 = scmp.lt.s32.totalorder %s4918_s29, %s4911_s14 }
  0xe9   : > { %p4915_p12 = pneg %p4914_p3  ;;  %p4921_p7 = por %p4920_p1, %p4919_p2 }
  0xeb   : > { %p4922_p0 = pnand %p4921_p7, %p4915_p12 }
  0xed   : > { %4925 = shalt.err (!%p4922_p0)
}
  0xee   : > { %4405 = dma.hbm_to_vmem [thread:$0]  (!%p6126_p9), %s5422_s16, 1024, %s5426_s24, %s672_s26, %s6118_s13, %s6118_s13, %s6117_s9  }
  0xef   : > { %p6129_p10 = scmp.ne.s32.totalorder %s6108_s23, 0 }
  0xf0   : > { %p6130_p6 = scmp.eq.s32.totalorder (!%p6129_p10), %s5176_s0, 0 }
  0xf1   : > { %700 = sbr.rel (%p6129_p10) target bundleno = 5311 (0x14bf), region = 88 }
  0xf8   : > { %4995 = dma.done.wait (%p6130_p6), [#allocation3], 256   ;;  %p6131_p4 = pmov %p6130_p6 }
  0xf9   : > { %s706_s18 = sand.u32 1, %s5176_s0   ;;  %s708_s21 = sand.u32 1, %s5028_s28  }
  0xfa   : > { %4997 = vsyncadd (%p6131_p4), [#allocation3], 4294967040  ;;  %s4355_s6 = smul.u32 768, %s708_s21  ;;  %s707_s17 = scalar_lea.sflag [#allocation6], %s706_s18 }
  0xfb   : > { %p6132_p11 = scmp.ne.s32.totalorder %s6107_s2, 0 }
  0xfc   : > { %s5463_s27 = scalar_lea.vmem [#allocation5], %s4355_s6 }
  0xfd   : > { %4999 = dma.done.wait (%p6132_p11), %s707_s17, 12480  }
  0xfe   : > { %5001 = vsyncadd (%p6132_p11), %s707_s17, 4294954816  ;;  %s4356_s23 = smul.u32 12, %s708_s21  ;;  %s3868_s9 = sshll.u32 %s708_s21, 8 }
  0xff   : > { %s725_s15 = scalar_lea.sflag [#allocation9], %s706_s18  ;;  %s5471_s16 = scalar_lea.vmem [#allocation8], %s3868_s9 }
 0x100   : > { %s5469_s13 = scalar_lea.vmem [#allocation7], %s4356_s23 }
 0x101   : > { %5003 = dma.done.wait (%p6132_p11), %s725_s15, 5120  }
 0x102   : > { %5005 = vsyncadd (%p6132_p11), %s725_s15, 4294962176  ;;  %s3869_s8 = sshll.u32 %s708_s21, 6  ;;  %s743_s26 = scalar_lea.sflag [#allocation12], %s706_s18 }
 0x103   : > { %s5477_s24 = scalar_lea.vmem [#allocation10], %s3869_s8  ;;  %s5479_s7 = scalar_lea.vmem [#allocation11], %s3869_s8 }
 0x104   : > { %5007 = dma.done.wait (%p6132_p11), %s743_s26, 1024  }
 0x105   : > { %5009 = vsyncadd (%p6132_p11), %s743_s26, 4294966272  ;;  %p6133_p9 = pmov %p6131_p4 }
 0x106   : > { %p6134_p5 = pmov %p6131_p4 }
 0x107   : > { %5011 = dma.done.wait (%p6133_p9), [#allocation12], 1024  }
 0x108   : > { %5013 = vsyncadd (%p6134_p5), [#allocation12], 4294966272  ;;  %p839_p8 = scmp.lt.s32.totalorder %s5176_s0, 1  ;;  %s6136_s18 = sld [smem:[#allocation33_spill]] }
 0x109   : > { %s6137_s23 = sld [smem:[#allocation34_spill]]  ;;  %s6138_s26 = sld [smem:[#allocation35_spill]] }
 0x10a   : > { %s5491_s30 = scalar_select %p839_p8, %s5176_s0, 1 }
 0x10b   : > { %s6139_s5 = sld [smem:[#allocation37_spill]]  ;;  %s6140_s1 = sld [smem:[#allocation38_spill]] }
 0x10c   : > { %s844_s11 = scalar_lea.vmem %s6047_s3, %s5491_s30  ;;  %p6141_p13 = scmp.ne.s32.totalorder %s5176_s0, 0 }
 0x10d   : > { %v865_v0 = vld [vmem:[#allocation2] sm:$0xff] (!%p6141_p13)  ;;  %v866_v1 = vld [vmem:[#allocation2 + $0x8] sm:$0xff] (!%p6141_p13) }
 0x10e   : > { %s847_s21 = scalar_lea.vmem %s6136_s18, %s5491_s30  ;;  %864 = sbr.rel (%p6141_p13) target bundleno = 277 (0x115), region = 120  ;;  %867 = vst [vmem:[#allocation14] sm:$0xff] (!%p6141_p13), %v865_v0  ;;  %868 = vst [vmem:[#allocation14 + $0x8] sm:$0xff] (!%p6141_p13), %v866_v1 }
 0x10f   : > { %s850_s9 = scalar_lea.vmem %s6137_s23, %s5491_s30  ;;  %s853_s19 = scalar_lea.vmem %s6138_s26, %s5491_s30 }
 0x111   : > { %s856_s25 = scalar_lea.vmem %s6139_s5, %s5491_s30  ;;  %s859_s14 = scalar_lea.vmem %s6140_s1, %s5491_s30 }
 0x115 PF: > { %v872_v2 = vld [vmem:[#allocation14] sm:$0xff]  ;;  %v873_v3 = vld [vmem:[#allocation14 + $0x8] sm:$0xff]  ;;  %v869_v12 = vlaneseq  ;;  %v5051_v49 = vmov 0   ;;  %s6142_s4 = sld [smem:[#allocation29_spill]]  ;;  %v3874_v63 = vld [vmem:[%s844_s11] ss:$0 sm:$0xff] }
 0x116   : > { %876 = vadd.xlane.f32.xlu0 %v872_v2  ;;  %v4466_v4 = vld [vmem:[%s5463_s27 + $0x4] ss:$48 sps:$4 sm:$0xff]   ;;  %v4468_v5 = vld [vmem:[%s5463_s27 + $0xc] ss:$48 sps:$4 sm:$0xff]   ;;  %v4470_v6 = vld [vmem:[%s5463_s27] ss:$48 sps:$4 sm:$0xff]   ;;  %1589 = vmatprep.mubr.bf16.mxu0 %v5051_v49 }
 0x117   : > { %v4471_v7 = vld [vmem:[%s5463_s27 + $0x8] ss:$48 sps:$4 sm:$0xff]   ;;  %v4472_v8 = vld [vmem:[%s5463_s27 + $0x64] ss:$48 sps:$4 sm:$0xff]   ;;  %v4474_v9 = vld [vmem:[%s5463_s27 + $0x6c] ss:$48 sps:$4 sm:$0xff]   ;;  %1557 = vmatprep.subr.bf16.mxu0 %v4466_v4  ;;  %1600 = vmatprep.subr.bf16.mxu1 %v4468_v5 }
 0x118   : > { %v4476_v10 = vld [vmem:[%s5463_s27 + $0x60] ss:$48 sps:$4 sm:$0xff]   ;;  %1558 = vmatpush1.bf16.msra.mxu0 %v4470_v6  ;;  %1601 = vmatpush1.bf16.msra.mxu1 %v4471_v7  ;;  %v4477_v11 = vld [vmem:[%s5463_s27 + $0x68] ss:$48 sps:$4 sm:$0xff]   ;;  %v5532_v13 = vand.u32 127, %v869_v12  ;;  %vm5053_vm1 = vmmov 0  }
 0x119   : > { %1559 = vmatprep.subr.bf16.mxu0 %v4472_v8  ;;  %1602 = vmatprep.subr.bf16.mxu1 %v4474_v9  ;;  %v4478_v24 = vld [vmem:[%s5463_s27 + $0xc4] ss:$48 sps:$4 sm:$0xff]   ;;  %v4480_v25 = vld [vmem:[%s5463_s27 + $0xcc] ss:$48 sps:$4 sm:$0xff]   ;;  %v4482_v26 = vld [vmem:[%s5463_s27 + $0xc0] ss:$48 sps:$4 sm:$0xff]  }
 0x11a   : > { %878 = vadd.xlane.f32.xlu0 %v873_v3  ;;  %vm871_vm0 = vcmp.lt.s32.totalorder %v5532_v13, 32  ;;  %v4483_v27 = vld [vmem:[%s5463_s27 + $0xc8] ss:$48 sps:$4 sm:$0xff]   ;;  %v4484_v28 = vld [vmem:[%s5463_s27 + $0x124] ss:$48 sps:$4 sm:$0xff]   ;;  %1632 = vmatprep.mubr.bf16.mxu1 %v5051_v49  ;;  %vm1995_vm2 = vcmask 1043456  }
 0x11b   : > { %v4486_v29 = vld [vmem:[%s5463_s27 + $0x12c] ss:$48 sps:$4 sm:$0xff]   ;;  %v4488_v30 = vld [vmem:[%s5463_s27 + $0x120] ss:$48 sps:$4 sm:$0xff]   ;;  %v4489_v31 = vld [vmem:[%s5463_s27 + $0x128] ss:$48 sps:$4 sm:$0xff]   ;;  %s6143_s2 = scalar_lea.vmem %s6142_s4, %s5491_s30 }
 0x11c   : > { %1560 = vmatpush1.bf16.msra.mxu0 %v4476_v10  ;;  %1603 = vmatpush1.bf16.msra.mxu1 %v4477_v11  ;;  %v4490_v32 = vld [vmem:[%s5463_s27 + $0x184] ss:$48 sps:$4 sm:$0xff]   ;;  %v4492_v33 = vld [vmem:[%s5463_s27 + $0x18c] ss:$48 sps:$4 sm:$0xff]   ;;  %v4494_v34 = vld [vmem:[%s5463_s27 + $0x180] ss:$48 sps:$4 sm:$0xff]  }
 0x11d   : > { %1561 = vmatprep.subr.bf16.mxu0 %v4478_v24  ;;  %1604 = vmatprep.subr.bf16.mxu1 %v4480_v25  ;;  %v4495_v35 = vld [vmem:[%s5463_s27 + $0x188] ss:$48 sps:$4 sm:$0xff]   ;;  %v4496_v36 = vld [vmem:[%s5463_s27 + $0x1e4] ss:$48 sps:$4 sm:$0xff]   ;;  %v4498_v37 = vld [vmem:[%s5463_s27 + $0x1ec] ss:$48 sps:$4 sm:$0xff]  }
 0x11e   : > { %v4500_v38 = vld [vmem:[%s5463_s27 + $0x1e0] ss:$48 sps:$4 sm:$0xff]   ;;  %v4501_v39 = vld [vmem:[%s5463_s27 + $0x1e8] ss:$48 sps:$4 sm:$0xff]   ;;  %v4502_v40 = vld [vmem:[%s5463_s27 + $0x244] ss:$48 sps:$4 sm:$0xff]  }
 0x11f   : > { %v4504_v41 = vld [vmem:[%s5463_s27 + $0x24c] ss:$48 sps:$4 sm:$0xff]   ;;  %v4506_v42 = vld [vmem:[%s5463_s27 + $0x240] ss:$48 sps:$4 sm:$0xff]   ;;  %v4507_v43 = vld [vmem:[%s5463_s27 + $0x248] ss:$48 sps:$4 sm:$0xff]  }
 0x120   : > { %1562 = vmatpush1.bf16.msra.mxu0 %v4482_v26  ;;  %1605 = vmatpush1.bf16.msra.mxu1 %v4483_v27  ;;  %v4508_v44 = vld [vmem:[%s5463_s27 + $0x2a4] ss:$48 sps:$4 sm:$0xff]   ;;  %v4510_v45 = vld [vmem:[%s5463_s27 + $0x2ac] ss:$48 sps:$4 sm:$0xff]   ;;  %v4512_v46 = vld [vmem:[%s5463_s27 + $0x2a0] ss:$48 sps:$4 sm:$0xff]  }
 0x121   : > { %1563 = vmatprep.subr.bf16.mxu0 %v4484_v28  ;;  %1606 = vmatprep.subr.bf16.mxu1 %v4486_v29  ;;  %v4513_v47 = vld [vmem:[%s5463_s27 + $0x2a8] ss:$48 sps:$4 sm:$0xff]   ;;  %v4516_v48 = vld [vmem:[%s5463_s27 + $0x14] ss:$48 sps:$4 sm:$0xff]   ;;  %v4519_v50 = vld [vmem:[%s5463_s27 + $0x1c] ss:$48 sps:$4 sm:$0xff]  }
 0x122   : > { %v3873_v59 = vld [vmem:[%s6143_s2] ss:$0 sm:$0xff]  ;;  %v4517_v4 = vld [vmem:[%s5463_s27 + $0x18] ss:$48 sps:$4 sm:$0xff]   ;;  %v4522_v6 = vld [vmem:[%s5463_s27 + $0x74] ss:$48 sps:$4 sm:$0xff]  }
 0x123   : > { %v4525_v7 = vld [vmem:[%s5463_s27 + $0x7c] ss:$48 sps:$4 sm:$0xff]   ;;  %v4520_v8 = vld [vmem:[%s5463_s27 + $0x70] ss:$48 sps:$4 sm:$0xff]   ;;  %v4523_v9 = vld [vmem:[%s5463_s27 + $0x78] ss:$48 sps:$4 sm:$0xff]  }
 0x124   : > { %1564 = vmatpush1.bf16.msra.mxu0 %v4488_v30  ;;  %1607 = vmatpush1.bf16.msra.mxu1 %v4489_v31  ;;  %v4528_v10 = vld [vmem:[%s5463_s27 + $0xd4] ss:$48 sps:$4 sm:$0xff]   ;;  %v4531_v11 = vld [vmem:[%s5463_s27 + $0xdc] ss:$48 sps:$4 sm:$0xff]   ;;  %v4544_v26 = vld [vmem:[%s5463_s27 + $0x1f0] ss:$48 sps:$4 sm:$0xff]  }
 0x125   : > { %1565 = vmatprep.subr.bf16.mxu0 %v4490_v32  ;;  %1608 = vmatprep.subr.bf16.mxu1 %v4492_v33  ;;  %v4546_v24 = vld [vmem:[%s5463_s27 + $0x1f4] ss:$48 sps:$4 sm:$0xff]   ;;  %v4549_v25 = vld [vmem:[%s5463_s27 + $0x1fc] ss:$48 sps:$4 sm:$0xff]   ;;  %v4547_v27 = vld [vmem:[%s5463_s27 + $0x1f8] ss:$48 sps:$4 sm:$0xff]  }
 0x126   : > { %v4552_v28 = vld [vmem:[%s5463_s27 + $0x254] ss:$48 sps:$4 sm:$0xff]   ;;  %v4555_v29 = vld [vmem:[%s5463_s27 + $0x25c] ss:$48 sps:$4 sm:$0xff]   ;;  %v4550_v30 = vld [vmem:[%s5463_s27 + $0x250] ss:$48 sps:$4 sm:$0xff]  }
 0x127   : > { %v4553_v31 = vld [vmem:[%s5463_s27 + $0x258] ss:$48 sps:$4 sm:$0xff]   ;;  %v4558_v32 = vld [vmem:[%s5463_s27 + $0x2b4] ss:$48 sps:$4 sm:$0xff]   ;;  %v4561_v33 = vld [vmem:[%s5463_s27 + $0x2bc] ss:$48 sps:$4 sm:$0xff]  }
 0x128   : > { %1566 = vmatpush1.bf16.msra.mxu0 %v4494_v34  ;;  %1609 = vmatpush1.bf16.msra.mxu1 %v4495_v35  ;;  %v4556_v34 = vld [vmem:[%s5463_s27 + $0x2b0] ss:$48 sps:$4 sm:$0xff]   ;;  %v4559_v35 = vld [vmem:[%s5463_s27 + $0x2b8] ss:$48 sps:$4 sm:$0xff]   ;;  %vm1967_vm4 = vcmask 64512   ;;  %p4044_p3 = scmp.ge.s32.totalorder %s5176_s0, 1 }
 0x129   : > { %1567 = vmatprep.subr.bf16.mxu0 %v4496_v36  ;;  %1610 = vmatprep.subr.bf16.mxu1 %v4498_v37  ;;  %v4564_v36 = vld [vmem:[%s5463_s27 + $0x24] ss:$48 sps:$4 sm:$0xff]   ;;  %v4567_v37 = vld [vmem:[%s5463_s27 + $0x2c] ss:$48 sps:$4 sm:$0xff]  }
 0x12c   : > { %1568 = vmatpush1.bf16.msra.mxu0 %v4500_v38  ;;  %1611 = vmatpush1.bf16.msra.mxu1 %v4501_v39  ;;  %v4562_v38 = vld [vmem:[%s5463_s27 + $0x20] ss:$48 sps:$4 sm:$0xff]   ;;  %v4565_v39 = vld [vmem:[%s5463_s27 + $0x28] ss:$48 sps:$4 sm:$0xff]  }
 0x12d   : > { %1569 = vmatprep.subr.bf16.mxu0 %v4502_v40  ;;  %1612 = vmatprep.subr.bf16.mxu1 %v4504_v41  ;;  %v4570_v40 = vld [vmem:[%s5463_s27 + $0x84] ss:$48 sps:$4 sm:$0xff]   ;;  %v4573_v41 = vld [vmem:[%s5463_s27 + $0x8c] ss:$48 sps:$4 sm:$0xff]  }
 0x130   : > { %1570 = vmatpush1.bf16.msra.mxu0 %v4506_v42  ;;  %1613 = vmatpush1.bf16.msra.mxu1 %v4507_v43  ;;  %v4568_v42 = vld [vmem:[%s5463_s27 + $0x80] ss:$48 sps:$4 sm:$0xff]   ;;  %v4571_v43 = vld [vmem:[%s5463_s27 + $0x88] ss:$48 sps:$4 sm:$0xff]  }
 0x131   : > { %1571 = vmatprep.subr.bf16.mxu0 %v4508_v44  ;;  %1614 = vmatprep.subr.bf16.mxu1 %v4510_v45  ;;  %v4576_v44 = vld [vmem:[%s5463_s27 + $0xe4] ss:$48 sps:$4 sm:$0xff]   ;;  %v4579_v45 = vld [vmem:[%s5463_s27 + $0xec] ss:$48 sps:$4 sm:$0xff]  }
 0x134   : > { %1572 = vmatpush1.bf16.msra.mxu0 %v4512_v46  ;;  %1615 = vmatpush1.bf16.msra.mxu1 %v4513_v47  ;;  %v4574_v46 = vld [vmem:[%s5463_s27 + $0xe0] ss:$48 sps:$4 sm:$0xff]   ;;  %v4577_v47 = vld [vmem:[%s5463_s27 + $0xe8] ss:$48 sps:$4 sm:$0xff]  }
 0x135   : > { %1643 = vmatprep.subr.bf16.mxu0 %v4516_v48  ;;  %1686 = vmatprep.subr.bf16.mxu1 %v4519_v50  ;;  %v4582_v48 = vld [vmem:[%s5463_s27 + $0x144] ss:$48 sps:$4 sm:$0xff]   ;;  %v4585_v50 = vld [vmem:[%s5463_s27 + $0x14c] ss:$48 sps:$4 sm:$0xff]  }
 0x1a3   : > { %v877_v14 = vpop.xlane.xlu0 %876 }
 0x1a4   : > { %v880_v15 = vmul.f32 0.03125, %v877_v14  ;;  %v4526_v14 = vld [vmem:[%s5463_s27 + $0xd0] ss:$48 sps:$4 sm:$0xff]  }
 0x1a6   : > { %v882_v16 = vsub.f32 %v872_v2, %v880_v15  ;;  %v4529_v15 = vld [vmem:[%s5463_s27 + $0xd8] ss:$48 sps:$4 sm:$0xff]  }
 0x1a7   : > { %v879_v17 = vpop.xlane.xlu0 %878 }
 0x1a8   : > { %v881_v18 = vmul.f32 0.03125, %v879_v17  ;;  %v5537_v19 = vsel %vm871_vm0, %v882_v16, 0.0  ;;  %v4534_v16 = vld [vmem:[%s5463_s27 + $0x134] ss:$48 sps:$4 sm:$0xff]   ;;  %v4537_v17 = vld [vmem:[%s5463_s27 + $0x13c] ss:$48 sps:$4 sm:$0xff]  }
 0x1a9   : > { %v886_v20 = vmul.f32 %v5537_v19, %v5537_v19 }
 0x1aa   : > { %v883_v21 = vsub.f32 %v873_v3, %v881_v18  ;;  %v4514_v3 = vld [vmem:[%s5463_s27 + $0x10] ss:$48 sps:$4 sm:$0xff]  }
 0x1ab   : > { %888 = vadd.xlane.f32.xlu1 %v886_v20  ;;  %v4532_v18 = vld [vmem:[%s5463_s27 + $0x130] ss:$48 sps:$4 sm:$0xff]   ;;  %v4540_v20 = vld [vmem:[%s5463_s27 + $0x194] ss:$48 sps:$4 sm:$0xff]  }
 0x1ac   : > { %v5543_v22 = vsel %vm871_vm0, %v883_v21, 0.0  ;;  %v4543_v21 = vld [vmem:[%s5463_s27 + $0x19c] ss:$48 sps:$4 sm:$0xff]  }
 0x1ad   : > { %v887_v23 = vmul.f32 %v5543_v22, %v5543_v22 }
 0x1af   : > { %890 = vadd.xlane.f32.xlu1 %v887_v23  ;;  %v4541_v23 = vld [vmem:[%s5463_s27 + $0x198] ss:$48 sps:$4 sm:$0xff]  }
 0x238   : > { %v889_v51 = vpop.xlane.xlu1 %888 }
 0x239   : > { %v892_v52 = vmul.f32 0.03125, %v889_v51  ;;  %v4580_v51 = vld [vmem:[%s5463_s27 + $0x140] ss:$48 sps:$4 sm:$0xff]  }
 0x23b   : > { %v894_v53 = vadd.f32 1e-05, %v892_v52  ;;  %v4583_v52 = vld [vmem:[%s5463_s27 + $0x148] ss:$48 sps:$4 sm:$0xff]  }
 0x23c   : > { %v891_v54 = vpop.xlane.xlu1 %890 }
 0x23d   : > { %4658 = vrsqrt.f32 %v894_v53  ;;  %v893_v55 = vmul.f32 0.03125, %v891_v54  ;;  %v4591_v53 = vld [vmem:[%s5463_s27 + $0x1ac] ss:$48 sps:$4 sm:$0xff]   ;;  %v4586_v54 = vld [vmem:[%s5463_s27 + $0x1a0] ss:$48 sps:$4 sm:$0xff]  }
 0x23f   : > { %v895_v56 = vadd.f32 1e-05, %v893_v55  ;;  %v4589_v55 = vld [vmem:[%s5463_s27 + $0x1a8] ss:$48 sps:$4 sm:$0xff]  }
 0x241   : > { %4660 = vrsqrt.f32 %v895_v56  ;;  %v4594_v56 = vld [vmem:[%s5463_s27 + $0x204] ss:$48 sps:$4 sm:$0xff]  }
 0x247   : > { %v4659_v57 = vpop.eup %4658 }
 0x248   : > { %v898_v58 = vmul.f32 %v4659_v57, %v5537_v19  ;;  %v4535_v19 = vld [vmem:[%s5463_s27 + $0x138] ss:$48 sps:$4 sm:$0xff]   ;;  %v4597_v57 = vld [vmem:[%s5463_s27 + $0x20c] ss:$48 sps:$4 sm:$0xff]  }
 0x24a   : > { %v906_v61 = vmul.f32 %v3873_v59, %v898_v58  ;;  %v4592_v58 = vld [vmem:[%s5463_s27 + $0x200] ss:$48 sps:$4 sm:$0xff]  }
 0x24b   : > { %v4661_v60 = vpop.eup %4660 }
 0x24c   : > { %v899_v62 = vmul.f32 %v4661_v60, %v5543_v22  ;;  %v914_v1 = vadd.f32 %v3874_v63, %v906_v61  ;;  %v4538_v22 = vld [vmem:[%s5463_s27 + $0x190] ss:$48 sps:$4 sm:$0xff]   ;;  %v4600_v60 = vld [vmem:[%s5463_s27 + $0x264] ss:$48 sps:$4 sm:$0xff]   ;;  %v4603_v61 = vld [vmem:[%s5463_s27 + $0x26c] ss:$48 sps:$4 sm:$0xff]  }
 0x24e   : > { %v907_v0 = vmul.f32 %v3873_v59, %v899_v62  ;;  %v4595_v59 = vld [vmem:[%s5463_s27 + $0x208] ss:$48 sps:$4 sm:$0xff]   ;;  %v4598_v62 = vld [vmem:[%s5463_s27 + $0x260] ss:$48 sps:$4 sm:$0xff]  }
 0x250   : > { %v915_v2 = vadd.f32 %v3874_v63, %v907_v0  ;;  %v4601_v63 = vld [vmem:[%s5463_s27 + $0x268] ss:$48 sps:$4 sm:$0xff]   ;;  %v4606_v0 = vld [vmem:[%s5463_s27 + $0x2c4] ss:$48 sps:$4 sm:$0xff]  }
 0x252   : > { %v5589_v5 = vpack.c.bf16 %v915_v2, %v914_v1  ;;  %v4609_v1 = vld [vmem:[%s5463_s27 + $0x2cc] ss:$48 sps:$4 sm:$0xff]   ;;  %v4604_v2 = vld [vmem:[%s5463_s27 + $0x2c0] ss:$48 sps:$4 sm:$0xff]  }
 0x254   : > { %1590 = vmatmul.mubr.bf16.vlgmr.msra.gmra.mrb[0].mxu0 %v5589_v5  ;;  %1633 = vmatmul.mubr.bf16.vlgmr.msra.gmra.mrb[0].mxu1 %v5589_v5 }
 0x255   : > { %1644 = vmatpush1.bf16.msra.mxu0 %v4514_v3  ;;  %1687 = vmatpush1.bf16.msra.mxu1 %v4517_v4  ;;  %v4607_v3 = vld [vmem:[%s5463_s27 + $0x2c8] ss:$48 sps:$4 sm:$0xff]   ;;  %v5052_v4 = vmov 0.0  }
 0x256   : > { %1645 = vmatprep.subr.bf16.mxu0 %v4522_v6  ;;  %1688 = vmatprep.subr.bf16.mxu1 %v4525_v7  ;;  %v5668_v6 = vshrl.u32 %v869_v12, 7 }
 0x257   : > { %1675 = vmatprep.mubr.bf16.mxu0 %v5051_v49  ;;  %1718 = vmatprep.mubr.bf16.mxu1 %v5051_v49 }
 0x258   : > { %v1019_v7 = vsub.s32 0, %v5668_v6  ;;  %vm1885_vm3 = vcmp.le.s32.totalorder %v5532_v13, %v5668_v6 }
 0x259   : > { %1646 = vmatpush1.bf16.msra.mxu0 %v4520_v8  ;;  %1689 = vmatpush1.bf16.msra.mxu1 %v4523_v9  ;;  %v1027_v8 = vsub.s32 2, %v5668_v6  ;;  %v1023_v9 = vsub.s32 1, %v5668_v6 }
 0x25a   : > { %1647 = vmatprep.subr.bf16.mxu0 %v4528_v10  ;;  %1690 = vmatprep.subr.bf16.mxu1 %v4531_v11  ;;  %v1031_v10 = vsub.s32 3, %v5668_v6 }
 0x25d   : > { %1648 = vmatpush1.bf16.msra.mxu0 %v4526_v14  ;;  %1691 = vmatpush1.bf16.msra.mxu1 %v4529_v15 }
 0x25e   : > { %1649 = vmatprep.subr.bf16.mxu0 %v4534_v16  ;;  %1692 = vmatprep.subr.bf16.mxu1 %v4537_v17 }
 0x261   : > { %1650 = vmatpush1.bf16.msra.mxu0 %v4532_v18  ;;  %1693 = vmatpush1.bf16.msra.mxu1 %v4535_v19 }
 0x262   : > { %1651 = vmatprep.subr.bf16.mxu0 %v4540_v20  ;;  %1694 = vmatprep.subr.bf16.mxu1 %v4543_v21 }
 0x265   : > { %1652 = vmatpush1.bf16.msra.mxu0 %v4538_v22  ;;  %1695 = vmatpush1.bf16.msra.mxu1 %v4541_v23 }
 0x266   : > { %1653 = vmatprep.subr.bf16.mxu0 %v4546_v24  ;;  %1696 = vmatprep.subr.bf16.mxu1 %v4549_v25 }
 0x269   : > { %1654 = vmatpush1.bf16.msra.mxu0 %v4544_v26  ;;  %1697 = vmatpush1.bf16.msra.mxu1 %v4547_v27 }
 0x26a   : > { %1655 = vmatprep.subr.bf16.mxu0 %v4552_v28  ;;  %1698 = vmatprep.subr.bf16.mxu1 %v4555_v29 }
 0x26d   : > { %1656 = vmatpush1.bf16.msra.mxu0 %v4550_v30  ;;  %1699 = vmatpush1.bf16.msra.mxu1 %v4553_v31 }
 0x26e   : > { %1657 = vmatprep.subr.bf16.mxu0 %v4558_v32  ;;  %1700 = vmatprep.subr.bf16.mxu1 %v4561_v33 }
 0x271   : > { %1658 = vmatpush1.bf16.msra.mxu0 %v4556_v34  ;;  %1701 = vmatpush1.bf16.msra.mxu1 %v4559_v35 }
 0x272   : > { %1729 = vmatprep.subr.bf16.mxu0 %v4564_v36  ;;  %1772 = vmatprep.subr.bf16.mxu1 %v4567_v37  ;;  %v1035_v36 = vsub.s32 4, %v5668_v6  ;;  %v1043_v37 = vsub.s32 6, %v5668_v6 }
 0x274   : > { %1676 = vmatmul.mubr.bf16.vlgmr.msra.gmra.mrb[4].mxu0 %v5589_v5  ;;  %1719 = vmatmul.mubr.bf16.vlgmr.msra.gmra.mrb[4].mxu1 %v5589_v5 }
 0x275   : > { %1730 = vmatpush1.bf16.msra.mxu0 %v4562_v38  ;;  %1773 = vmatpush1.bf16.msra.mxu1 %v4565_v39  ;;  %v1039_v38 = vsub.s32 5, %v5668_v6  ;;  %v1047_v39 = vsub.s32 7, %v5668_v6 }
 0x276   : > { %1731 = vmatprep.subr.bf16.mxu0 %v4570_v40  ;;  %1774 = vmatprep.subr.bf16.mxu1 %v4573_v41 }
 0x277   : > { %1761 = vmatprep.mubr.bf16.mxu0 %v5051_v49  ;;  %1804 = vmatprep.mubr.bf16.mxu1 %v5051_v49  ;;  %v4588_v49 = vld [vmem:[%s5463_s27 + $0x1a4] ss:$48 sps:$4 sm:$0xff]  }
 0x279   : > { %1732 = vmatpush1.bf16.msra.mxu0 %v4568_v42  ;;  %1775 = vmatpush1.bf16.msra.mxu1 %v4571_v43 }
 0x27a   : > { %1733 = vmatprep.subr.bf16.mxu0 %v4576_v44  ;;  %1776 = vmatprep.subr.bf16.mxu1 %v4579_v45 }
 0x27d   : > { %1734 = vmatpush1.bf16.msra.mxu0 %v4574_v46  ;;  %1777 = vmatpush1.bf16.msra.mxu1 %v4577_v47 }
 0x27e   : > { %1735 = vmatprep.subr.bf16.mxu0 %v4582_v48  ;;  %1778 = vmatprep.subr.bf16.mxu1 %v4585_v50 }
 0x281   : > { %1736 = vmatpush1.bf16.msra.mxu0 %v4580_v51  ;;  %1779 = vmatpush1.bf16.msra.mxu1 %v4583_v52 }
 0x282   : > { %1737 = vmatprep.subr.bf16.mxu0 %v4588_v49  ;;  %1780 = vmatprep.subr.bf16.mxu1 %v4591_v53 }
 0x285   : > { %1738 = vmatpush1.bf16.msra.mxu0 %v4586_v54  ;;  %1781 = vmatpush1.bf16.msra.mxu1 %v4589_v55 }
 0x286   : > { %1739 = vmatprep.subr.bf16.mxu0 %v4594_v56  ;;  %1782 = vmatprep.subr.bf16.mxu1 %v4597_v57 }
 0x289   : > { %1740 = vmatpush1.bf16.msra.mxu0 %v4592_v58  ;;  %1783 = vmatpush1.bf16.msra.mxu1 %v4595_v59 }
 0x28a   : > { %1741 = vmatprep.subr.bf16.mxu0 %v4600_v60  ;;  %1784 = vmatprep.subr.bf16.mxu1 %v4603_v61 }
 0x28d   : > { %1742 = vmatpush1.bf16.msra.mxu0 %v4598_v62  ;;  %1785 = vmatpush1.bf16.msra.mxu1 %v4601_v63 }
 0x28e   : > { %1743 = vmatprep.subr.bf16.mxu0 %v4606_v0  ;;  %1786 = vmatprep.subr.bf16.mxu1 %v4609_v1  ;;  %v1014_v0 = vld [vmem:[%s5469_s13 + $0x8] sm:$0xf] }
 0x28f   : > { %v1052_v1 = vrot.slane %v1014_v0, %v1019_v7 }
 0x291   : > { %1744 = vmatpush1.bf16.msra.mxu0 %v4604_v2  ;;  %1787 = vmatpush1.bf16.msra.mxu1 %v4607_v3  ;;  %v1060_v2 = vrot.slane %v1014_v0, %v1027_v8  ;;  %v1056_v3 = vrot.slane %v1014_v0, %v1023_v9 }
 0x292   : > { %4185 = vmatprep.subr.bf16.mxu0 %v5052_v4  ;;  %4191 = vmatprep.subr.bf16.mxu1 %v5052_v4 }
 0x294   : > { %1762 = vmatmul.mubr.bf16.vlgmr.msra.gmra.mrb[8].mxu0 %v5589_v5  ;;  %1805 = vmatmul.mubr.bf16.vlgmr.msra.gmra.mrb[8].mxu1 %v5589_v5  ;;  %v1013_v5 = vld [vmem:[%s5469_s13] sm:$0xff] }
 0x295   : > { %4187 = vmatprep.mubr.msk.bf16.mxu0 %vm5053_vm1, %v5052_v4  ;;  %4193 = vmatprep.mubr.msk.bf16.mxu1 %vm5053_vm1, %v5052_v4  ;;  %v1020_v11 = vrot.slane %v1013_v5, %v1019_v7  ;;  %v1028_v14 = vrot.slane %v1013_v5, %v1027_v8  ;;  %v1024_v15 = vrot.slane %v1013_v5, %v1023_v9 }
 0x296   : > { %v1032_v12 = vrot.slane %v1013_v5, %v1031_v10  ;;  %v1036_v40 = vrot.slane %v1013_v5, %v1035_v36  ;;  %v1044_v41 = vrot.slane %v1013_v5, %v1043_v37  ;;  %v1040_v42 = vrot.slane %v1013_v5, %v1039_v38 }
 0x297   : > { %v1048_v43 = vrot.slane %v1013_v5, %v1047_v39  ;;  %v1064_v5 = vrot.slane %v1014_v0, %v1031_v10 }
 0x327   : > { %v1591_v16 = vpop.f32.mrb[0].mxu0  ;;  %v1634_v17 = vpop.f32.mrb[0].mxu1 }
 0x328   : > { %v1592_v18 = vadd.f32 %v1591_v16, %v1020_v11  ;;  %v1635_v19 = vadd.f32 %v1634_v17, %v1028_v14  ;;  %v1593_v20 = vpop.f32.mrb[1].mxu0  ;;  %v1636_v21 = vpop.f32.mrb[1].mxu1 }
 0x329   : > { %v1594_v22 = vadd.f32 %v1593_v20, %v1024_v15  ;;  %v1637_v23 = vadd.f32 %v1636_v21, %v1032_v12  ;;  %v1595_v24 = vpop.f32.mrb[2].mxu0  ;;  %v1638_v25 = vpop.f32.mrb[2].mxu1 }
 0x32a   : > { %v1596_v26 = vadd.f32 %v1595_v24, %v1020_v11  ;;  %v1639_v27 = vadd.f32 %v1638_v25, %v1028_v14  ;;  %v1597_v28 = vpop.f32.mrb[3].mxu0  ;;  %v1640_v29 = vpop.f32.mrb[3].mxu1 }
 0x32b   : > { %v5683_v30 = vpack.c.bf16 %v1594_v22, %v1592_v18  ;;  %v5685_v31 = vpack.c.bf16 %v1637_v23, %v1635_v19  ;;  %v1598_v32 = vadd.f32 %v1597_v28, %v1024_v15  ;;  %v1641_v33 = vadd.f32 %v1640_v29, %v1032_v12 }
 0x32d   : > { %v5687_v34 = vpack.c.bf16 %v1598_v32, %v1596_v26  ;;  %v5689_v35 = vpack.c.bf16 %v1641_v33, %v1639_v27 }
 0x347   : > { %v1677_v44 = vpop.f32.mrb[4].mxu0  ;;  %v1720_v45 = vpop.f32.mrb[4].mxu1 }
 0x348   : > { %v1678_v46 = vadd.f32 %v1677_v44, %v1036_v40  ;;  %v1721_v47 = vadd.f32 %v1720_v45, %v1044_v41  ;;  %v1679_v48 = vpop.f32.mrb[5].mxu0  ;;  %v1722_v50 = vpop.f32.mrb[5].mxu1  ;;  %v5054_v44 = vmov -1e+09  }
 0x349   : > { %v1680_v51 = vadd.f32 %v1679_v48, %v1040_v42  ;;  %v1723_v52 = vadd.f32 %v1722_v50, %v1048_v43  ;;  %v1681_v49 = vpop.f32.mrb[6].mxu0  ;;  %v1724_v53 = vpop.f32.mrb[6].mxu1  ;;  %v5742_v45 = vsel %vm1885_vm3, 0.0, %v5054_v44 }
 0x34a   : > { %v1682_v54 = vadd.f32 %v1681_v49, %v1036_v40  ;;  %v1725_v55 = vadd.f32 %v1724_v53, %v1044_v41  ;;  %v1683_v56 = vpop.f32.mrb[7].mxu0  ;;  %v1726_v57 = vpop.f32.mrb[7].mxu1 }
 0x34b   : > { %v5695_v58 = vpack.c.bf16 %v1680_v51, %v1678_v46  ;;  %v5697_v59 = vpack.c.bf16 %v1723_v52, %v1721_v47  ;;  %v1684_v60 = vadd.f32 %v1683_v56, %v1040_v42  ;;  %v1727_v61 = vadd.f32 %v1726_v57, %v1048_v43 }
 0x34d   : > { %v5699_v62 = vpack.c.bf16 %v1684_v60, %v1682_v54  ;;  %v5701_v63 = vpack.c.bf16 %v1727_v61, %v1725_v55  ;;  %4186 = vmatpush3.bf16.xpose.msra.mxu0 %v5695_v58 }
 0x34e   : > { %4197 = vmatprep.subr.bf16.mxu0 %v5052_v4 }
 0x34f   : > { %4192 = vmatpush3.bf16.xpose.msra.mxu1 %v5699_v62 }
 0x350   : > { %4203 = vmatprep.subr.bf16.mxu1 %v5052_v4 }
 0x354   : > { %4188 = vmatmul.mubr.bf16.vlgmr.msra.gmra.mrb[12].mxu0 %v5683_v30 }
 0x355   : > { %4199 = vmatprep.mubr.msk.bf16.mxu0 %vm5053_vm1, %v5052_v4 }
 0x356   : > { %4194 = vmatmul.mubr.bf16.vlgmr.msra.gmra.mrb[12].mxu1 %v5687_v34 }
 0x357   : > { %4205 = vmatprep.mubr.msk.bf16.mxu1 %vm5053_vm1, %v5052_v4 }
 0x367   : > { %v1763_v11 = vpop.f32.mrb[8].mxu0  ;;  %v1806_v14 = vpop.f32.mrb[8].mxu1 }
 0x368   : > { %v1764_v15 = vadd.f32 %v1763_v11, %v1052_v1  ;;  %v1807_v12 = vadd.f32 %v1806_v14, %v1060_v2  ;;  %v1765_v16 = vpop.f32.mrb[9].mxu0  ;;  %v1808_v17 = vpop.f32.mrb[9].mxu1 }
 0x369   : > { %v1766_v18 = vadd.f32 %v1765_v16, %v1056_v3  ;;  %v1809_v19 = vadd.f32 %v1808_v17, %v1064_v5  ;;  %v1767_v20 = vpop.f32.mrb[10].mxu0  ;;  %v1810_v21 = vpop.f32.mrb[10].mxu1 }
 0x36a   : > { %v1768_v7 = vadd.f32 %v1767_v20, %v1052_v1  ;;  %v1811_v22 = vadd.f32 %v1810_v21, %v1060_v2  ;;  %v1769_v23 = vpop.f32.mrb[11].mxu0  ;;  %v1812_v8 = vpop.f32.mrb[11].mxu1 }
 0x36b   : > { %v4071_v24 = vpack.c.bf16 %v1766_v18, %v1764_v15  ;;  %v4072_v9 = vpack.c.bf16 %v1809_v19, %v1807_v12  ;;  %v1770_v25 = vadd.f32 %v1769_v23, %v1056_v3  ;;  %v1813_v26 = vadd.f32 %v1812_v8, %v1064_v5 }
 0x36c   : > { %v2131_v23 = vrot.slane %v5699_v62, 4  ;;  %v2129_v8 = vrot.slane %v5687_v34, 4 }
 0x36d   : > { %v2197_v10 = vrot.slane %v4071_v24, 4  ;;  %v2599_v27 = vrot.slane %v4072_v9, 4  ;;  %v4077_v28 = vpack.c.bf16 %v1770_v25, %v1768_v7  ;;  %v4078_v29 = vpack.c.bf16 %v1813_v26, %v1811_v22 }
 0x36e   : > { %v1997_v32 = vsel %vm1995_vm2, %v4071_v24, 0  ;;  %v5724_v33 = vsel %vm1995_vm2, %v4072_v9, 0  ;;  %v2087_v7 = vrot.slane %v5695_v58, 4  ;;  %v2085_v58 = vrot.slane %v5683_v30, 4 }
 0x36f   : > { %v2244_v36 = vrot.slane %v4077_v28, 4  ;;  %v2646_v37 = vrot.slane %v4078_v29, 4  ;;  %4198 = vmatpush3.bf16.msra.mxu0 %v1997_v32  ;;  %v2043_v38 = vsel %vm1995_vm2, %v4077_v28, 0  ;;  %v2202_v39 = vsel %vm1995_vm2, %v2197_v10, 0 }
 0x370   : > { %4204 = vmatpush3.bf16.msra.mxu1 %v2043_v38  ;;  %4209 = vmatprep.subr.bf16.mxu0 %v5052_v4  ;;  %v5730_v40 = vsel %vm1995_vm2, %v4078_v29, 0  ;;  %v5733_v41 = vsel %vm1995_vm2, %v2599_v27, 0 }
 0x371   : > { %4215 = vmatprep.subr.bf16.mxu1 %v5052_v4  ;;  %v2249_v42 = vsel %vm1995_vm2, %v2244_v36, 0  ;;  %v5738_v43 = vsel %vm1995_vm2, %v2646_v37, 0 }
 0x427   : > { %v1921_v46 = vpop.f32.mrb[12].mxu0 }
 0x428   : > { %v1922_v47 = vadd.f32 %v1921_v46, %v5742_v45  ;;  %v4189_v48 = vpop.f32.mrb[13].mxu0 }
 0x429   : > { %v1924_v50 = vpop.f32.mrb[14].mxu0  ;;  %v1961_v51 = vpop.f32.mrb[12].mxu1 }
 0x42a   : > { %v1962_v52 = vadd.f32 %v1961_v51, %v5742_v45  ;;  %v4190_v49 = vpop.f32.mrb[15].mxu0  ;;  %v4195_v53 = vpop.f32.mrb[13].mxu1  ;;  %v1968_v54 = vsel %vm1967_vm4, %v1922_v47, -inf }
 0x42b   : > { %v1964_v55 = vpop.f32.mrb[14].mxu1  ;;  %1969 = vmax.xlane.f32.xlu0 %v1968_v54 }
 0x42c   : > { %v4196_v56 = vpop.f32.mrb[15].mxu1  ;;  %v1971_v57 = vsel %vm1967_vm4, %v1962_v52, -inf }
 0x42d   : > { %1972 = vmax.xlane.f32.xlu1 %v1971_v57 }
 0x4b8   : > { %v1970_v60 = vpop.xlane.xlu0 %1969 }
 0x4b9   : > { %v1974_v61 = vsub.f32 %v1922_v47, %v1970_v60 }
 0x4ba   : > { %v1973_v0 = vpop.xlane.xlu1 %1972 }
 0x4bb   : > { %v1976_v1 = vmul.f32 1.442695, %v1974_v61  ;;  %v1975_v2 = vsub.f32 %v1962_v52, %v1973_v0 }
 0x4bd   : > { %4662 = vpow2.f32 %v1976_v1  ;;  %v1978_v3 = vmul.f32 1.442695, %v1975_v2 }
 0x4bf   : > { %4664 = vpow2.f32 %v1978_v3 }
 0x4c7   : > { %v4663_v5 = vpop.eup %4662 }
 0x4c8   : > { %v1980_v11 = vsel %vm1967_vm4, %v4663_v5, 0.0 }
 0x4c9   : > { %v4665_v14 = vpop.eup %4664  ;;  %1981 = vadd.xlane.f32.xlu0 %v1980_v11 }
 0x4ca   : > { %v1983_v15 = vsel %vm1967_vm4, %v4665_v14, 0.0 }
 0x4cb   : > { %1984 = vadd.xlane.f32.xlu1 %v1983_v15 }
 0x556   : > { %v1982_v12 = vpop.xlane.xlu0 %1981 }
 0x557   : > { %4666 = vrcp.f32 %v1982_v12 }
 0x558   : > { %v1985_v16 = vpop.xlane.xlu1 %1984 }
 0x559   : > { %4668 = vrcp.f32 %v1985_v16 }
 0x561   : > { %v4667_v17 = vpop.eup %4666 }
 0x562   : > { %v1988_v18 = vmul.f32 %v4667_v17, %v4663_v5 }
 0x563   : > { %v4669_v19 = vpop.eup %4668 }
 0x564   : > { %v1989_v20 = vmul.f32 %v4669_v19, %v4665_v14  ;;  %v1990_v21 = vpack.c.bf16 %v1988_v18, %v1988_v18 }
 0x566   : > { %4200 = vmatmul.mubr.msk.bf16.vlgmr.msra.gmra.mrb[16].mxu0 %vm1967_vm4, %v1990_v21  ;;  %v1991_v22 = vpack.c.bf16 %v1989_v20, %v1989_v20 }
 0x567   : > { %4210 = vmatpush3.bf16.xpose.msra.mxu0 %v2087_v7  ;;  %4211 = vmatprep.mubr.msk.bf16.mxu0 %vm5053_vm1, %v5052_v4 }
 0x568   : > { %4206 = vmatmul.mubr.msk.bf16.vlgmr.msra.gmra.mrb[16].mxu1 %vm1967_vm4, %v1991_v22  ;;  %4221 = vmatprep.subr.bf16.mxu0 %v5052_v4 }
 0x569   : > { %4216 = vmatpush3.bf16.xpose.msra.mxu1 %v2131_v23  ;;  %4217 = vmatprep.mubr.msk.bf16.mxu1 %vm5053_vm1, %v5052_v4 }
 0x56a   : > { %4227 = vmatprep.subr.bf16.mxu1 %v5052_v4 }
 0x56e   : > { %4212 = vmatmul.mubr.bf16.vlgmr.msra.gmra.mrb[20].mxu0 %v2085_v58 }
 0x56f   : > { %4222 = vmatpush3.bf16.msra.mxu0 %v2202_v39  ;;  %4223 = vmatprep.mubr.msk.bf16.mxu0 %vm5053_vm1, %v5052_v4 }
 0x570   : > { %4218 = vmatmul.mubr.bf16.vlgmr.msra.gmra.mrb[20].mxu1 %v2129_v8  ;;  %4233 = vmatprep.subr.bf16.mxu0 %v5052_v4 }
 0x571   : > { %4228 = vmatpush3.bf16.msra.mxu1 %v2249_v42  ;;  %4229 = vmatprep.mubr.msk.bf16.mxu1 %vm5053_vm1, %v5052_v4 }
 0x572   : > { %4239 = vmatprep.subr.bf16.mxu1 %v5052_v4 }
 0x639   : > { %v5768_v62 = vpop.f32.mrb[16].mxu0 }
 0x63a   : > { %v4201_v24 = vpop.f32.mrb[17].mxu0 }
 0x63b   : > { %v2036_v30 = vpop.f32.mrb[18].mxu0  ;;  %v5770_v9 = vpop.f32.mrb[16].mxu1 }
 0x63c   : > { %v2693_v34 = vpack.c.bf16 %v5770_v9, %v5768_v62  ;;  %v4202_v25 = vpop.f32.mrb[19].mxu0  ;;  %v4207_v26 = vpop.f32.mrb[17].mxu1 }
 0x63d   : > { %v2082_v10 = vpop.f32.mrb[18].mxu1 }
 0x63e   : > { %v4208_v27 = vpop.f32.mrb[19].mxu1 }
 0x641   : > { %v2123_v28 = vpop.f32.mrb[20].mxu0 }
 0x642   : > { %v2124_v29 = vadd.f32 %v2123_v28, %v5742_v45  ;;  %v4213_v32 = vpop.f32.mrb[21].mxu0 }
 0x643   : > { %v2126_v36 = vpop.f32.mrb[22].mxu0  ;;  %v2167_v37 = vpop.f32.mrb[20].mxu1 }
 0x644   : > { %v2168_v38 = vadd.f32 %v2167_v37, %v5742_v45  ;;  %v4214_v39 = vpop.f32.mrb[23].mxu0  ;;  %v4219_v42 = vpop.f32.mrb[21].mxu1  ;;  %v2173_v44 = vsel %vm1967_vm4, %v2124_v29, -inf }
 0x645   : > { %v2170_v46 = vpop.f32.mrb[22].mxu1  ;;  %2174 = vmax.xlane.f32.xlu0 %v2173_v44 }
 0x646   : > { %v4220_v47 = vpop.f32.mrb[23].mxu1  ;;  %v2176_v48 = vsel %vm1967_vm4, %v2168_v38, -inf }
 0x647   : > { %2177 = vmax.xlane.f32.xlu1 %v2176_v48 }
 0x6d2   : > { %v2175_v50 = vpop.xlane.xlu0 %2174 }
 0x6d3   : > { %v2179_v51 = vsub.f32 %v2124_v29, %v2175_v50 }
 0x6d4   : > { %v2178_v52 = vpop.xlane.xlu1 %2177 }
 0x6d5   : > { %v2181_v49 = vmul.f32 1.442695, %v2179_v51  ;;  %v2180_v53 = vsub.f32 %v2168_v38, %v2178_v52 }
 0x6d7   : > { %4670 = vpow2.f32 %v2181_v49  ;;  %v2183_v54 = vmul.f32 1.442695, %v2180_v53 }
 0x6d9   : > { %4672 = vpow2.f32 %v2183_v54  ;;  %v2489_v54 = vrot.slane %v5697_v59, 4 }
 0x6e1   : > { %v4671_v55 = vpop.eup %4670 }
 0x6e2   : > { %v2185_v56 = vsel %vm1967_vm4, %v4671_v55, 0.0 }
 0x6e3   : > { %v4673_v57 = vpop.eup %4672  ;;  %2186 = vadd.xlane.f32.xlu0 %v2185_v56  ;;  %v2533_v56 = vrot.slane %v5701_v63, 4 }
 0x6e4   : > { %v2188_v60 = vsel %vm1967_vm4, %v4673_v57, 0.0 }
 0x6e5   : > { %2189 = vadd.xlane.f32.xlu1 %v2188_v60 }
 0x770   : > { %v2187_v61 = vpop.xlane.xlu0 %2186 }
 0x771   : > { %4674 = vrcp.f32 %v2187_v61 }
 0x772   : > { %v2190_v0 = vpop.xlane.xlu1 %2189 }
 0x773   : > { %4676 = vrcp.f32 %v2190_v0 }
 0x77b   : > { %v4675_v1 = vpop.eup %4674 }
 0x77c   : > { %v2193_v2 = vmul.f32 %v4675_v1, %v4671_v55 }
 0x77d   : > { %v4677_v3 = vpop.eup %4676 }
 0x77e   : > { %v2194_v5 = vmul.f32 %v4677_v3, %v4673_v57  ;;  %v2195_v11 = vpack.c.bf16 %v2193_v2, %v2193_v2  ;;  %v2531_v57 = vrot.slane %v5689_v35, 4 }
 0x780   : > { %4224 = vmatmul.mubr.msk.bf16.vlgmr.msra.gmra.mrb[24].mxu0 %vm1967_vm4, %v2195_v11  ;;  %v2196_v14 = vpack.c.bf16 %v2194_v5, %v2194_v5 }
 0x781   : > { %4234 = vmatpush3.bf16.xpose.msra.mxu0 %v5697_v59  ;;  %4235 = vmatprep.mubr.msk.bf16.mxu0 %vm5053_vm1, %v5052_v4  ;;  %v2487_v59 = vrot.slane %v5685_v31, 4 }
 0x782   : > { %4230 = vmatmul.mubr.msk.bf16.vlgmr.msra.gmra.mrb[24].mxu1 %vm1967_vm4, %v2196_v14  ;;  %4245 = vmatprep.subr.bf16.mxu0 %v5052_v4 }
 0x783   : > { %4240 = vmatpush3.bf16.xpose.msra.mxu1 %v5701_v63  ;;  %4241 = vmatprep.mubr.msk.bf16.mxu1 %vm5053_vm1, %v5052_v4 }
 0x784   : > { %4251 = vmatprep.subr.bf16.mxu1 %v5052_v4 }
 0x788   : > { %4236 = vmatmul.mubr.bf16.vlgmr.msra.gmra.mrb[28].mxu0 %v5685_v31 }
 0x789   : > { %4246 = vmatpush3.bf16.msra.mxu0 %v5724_v33  ;;  %4247 = vmatprep.mubr.msk.bf16.mxu0 %vm5053_vm1, %v5052_v4 }
 0x78a   : > { %4242 = vmatmul.mubr.bf16.vlgmr.msra.gmra.mrb[28].mxu1 %v5689_v35  ;;  %4257 = vmatprep.subr.bf16.mxu0 %v5052_v4 }
 0x78b   : > { %4252 = vmatpush3.bf16.msra.mxu1 %v5730_v40  ;;  %4253 = vmatprep.mubr.msk.bf16.mxu1 %vm5053_vm1, %v5052_v4 }
 0x78c   : > { %4263 = vmatprep.subr.bf16.mxu1 %v5052_v4 }
 0x853   : > { %v5800_v15 = vpop.f32.mrb[24].mxu0 }
 0x854   : > { %v4225_v12 = vpop.f32.mrb[25].mxu0 }
 0x855   : > { %v2241_v16 = vpop.f32.mrb[26].mxu0  ;;  %v5802_v17 = vpop.f32.mrb[24].mxu1 }
 0x856   : > { %v2694_v33 = vpack.c.bf16 %v5802_v17, %v5800_v15  ;;  %v4226_v18 = vpop.f32.mrb[27].mxu0  ;;  %v4231_v19 = vpop.f32.mrb[25].mxu1  ;;  %v4616_v15 = vld [vmem:[%s5471_s16 + $0x58] sm:$0xff]   ;;  %v4631_v17 = vld [vmem:[%s5471_s16 + $0x90] sm:$0xff]  }
 0x857   : > { %v2288_v20 = vpop.f32.mrb[26].mxu1 }
 0x858   : > { %v4232_v21 = vpop.f32.mrb[27].mxu1 }
 0x85b   : > { %v2325_v7 = vpop.f32.mrb[28].mxu0 }
 0x85c   : > { %v2326_v40 = vadd.f32 %v2325_v7, %v5742_v45  ;;  %v4237_v22 = vpop.f32.mrb[29].mxu0 }
 0x85d   : > { %v2328_v23 = vpop.f32.mrb[30].mxu0  ;;  %v2365_v58 = vpop.f32.mrb[28].mxu1 }
 0x85e   : > { %v2366_v8 = vadd.f32 %v2365_v58, %v5742_v45  ;;  %v4238_v24 = vpop.f32.mrb[31].mxu0  ;;  %v4243_v30 = vpop.f32.mrb[29].mxu1  ;;  %v2371_v25 = vsel %vm1967_vm4, %v2326_v40, -inf }
 0x85f   : > { %v2368_v26 = vpop.f32.mrb[30].mxu1  ;;  %2372 = vmax.xlane.f32.xlu0 %v2371_v25 }
 0x860   : > { %v4244_v10 = vpop.f32.mrb[31].mxu1  ;;  %v2374_v27 = vsel %vm1967_vm4, %v2366_v8, -inf }
 0x861   : > { %2375 = vmax.xlane.f32.xlu1 %v2374_v27  ;;  %v4610_v10 = vld [vmem:[%s5471_s16 + $0x40] sm:$0xff]  }
 0x862   : > { %v4626_v27 = vld [vmem:[%s5471_s16 + $0xc0] sm:$0xff]  }
 0x8ec   : > { %v2373_v28 = vpop.xlane.xlu0 %2372 }
 0x8ed   : > { %v2377_v29 = vsub.f32 %v2326_v40, %v2373_v28 }
 0x8ee   : > { %v2376_v32 = vpop.xlane.xlu1 %2375 }
 0x8ef   : > { %v2379_v36 = vmul.f32 1.442695, %v2377_v29  ;;  %v2378_v37 = vsub.f32 %v2366_v8, %v2376_v32 }
 0x8f1   : > { %4678 = vpow2.f32 %v2379_v36  ;;  %v2381_v38 = vmul.f32 1.442695, %v2378_v37 }
 0x8f3   : > { %4680 = vpow2.f32 %v2381_v38  ;;  %v4611_v38 = vld [vmem:[%s5471_s16] sm:$0xff]  }
 0x8fb   : > { %v4679_v39 = vpop.eup %4678 }
 0x8fc   : > { %v2383_v42 = vsel %vm1967_vm4, %v4679_v39, 0.0 }
 0x8fd   : > { %v4681_v44 = vpop.eup %4680  ;;  %2384 = vadd.xlane.f32.xlu0 %v2383_v42 }
 0x8fe   : > { %v2386_v46 = vsel %vm1967_vm4, %v4681_v44, 0.0 }
 0x8ff   : > { %2387 = vadd.xlane.f32.xlu1 %v2386_v46  ;;  %v4627_v46 = vld [vmem:[%s5471_s16 + $0x80] sm:$0xff]  }
 0x98a   : > { %v2385_v47 = vpop.xlane.xlu0 %2384 }
 0x98b   : > { %4682 = vrcp.f32 %v2385_v47 }
 0x98c   : > { %v2388_v48 = vpop.xlane.xlu1 %2387 }
 0x98d   : > { %4684 = vrcp.f32 %v2388_v48  ;;  %v4628_v48 = vld [vmem:[%s5471_s16 + $0xc8] sm:$0xff]  }
 0x995   : > { %v4683_v50 = vpop.eup %4682 }
 0x996   : > { %v2391_v51 = vmul.f32 %v4683_v50, %v4679_v39  ;;  %v4613_v50 = vld [vmem:[%s5471_s16 + $0x8] sm:$0xff]  }
 0x997   : > { %v4685_v52 = vpop.eup %4684 }
 0x998   : > { %v2392_v49 = vmul.f32 %v4685_v52, %v4681_v44  ;;  %v2393_v53 = vpack.c.bf16 %v2391_v51, %v2391_v51  ;;  %v4612_v44 = vld [vmem:[%s5471_s16 + $0x48] sm:$0xff]   ;;  %v4614_v51 = vld [vmem:[%s5471_s16 + $0x50] sm:$0xff]  }
 0x999   : > { %v4629_v52 = vld [vmem:[%s5471_s16 + $0x88] sm:$0xff]  }
 0x99a   : > { %4248 = vmatmul.mubr.msk.bf16.vlgmr.msra.gmra.mrb[32].mxu0 %vm1967_vm4, %v2393_v53  ;;  %v2394_v55 = vpack.c.bf16 %v2392_v49, %v2392_v49  ;;  %v4630_v49 = vld [vmem:[%s5471_s16 + $0xd0] sm:$0xff]  }
 0x99b   : > { %4258 = vmatpush3.bf16.xpose.msra.mxu0 %v2489_v54  ;;  %4259 = vmatprep.mubr.msk.bf16.mxu0 %vm5053_vm1, %v5052_v4  ;;  %v4615_v53 = vld [vmem:[%s5471_s16 + $0x10] sm:$0xff]   ;;  %v4617_v54 = vld [vmem:[%s5471_s16 + $0x18] sm:$0xff]  }
 0x99c   : > { %4254 = vmatmul.mubr.msk.bf16.vlgmr.msra.gmra.mrb[32].mxu1 %vm1967_vm4, %v2394_v55  ;;  %4269 = vmatprep.subr.bf16.mxu0 %v5052_v4  ;;  %v4618_v55 = vld [vmem:[%s5471_s16 + $0x60] sm:$0xff]  }
 0x99d   : > { %4264 = vmatpush3.bf16.xpose.msra.mxu1 %v2533_v56  ;;  %4265 = vmatprep.mubr.msk.bf16.mxu1 %vm5053_vm1, %v5052_v4  ;;  %v4633_v56 = vld [vmem:[%s5471_s16 + $0x98] sm:$0xff]  }
 0x99e   : > { %4275 = vmatprep.subr.bf16.mxu1 %v5052_v4 }
 0x9a2   : > { %4260 = vmatmul.mubr.bf16.vlgmr.msra.gmra.mrb[36].mxu0 %v2487_v59  ;;  %v4634_v59 = vld [vmem:[%s5471_s16 + $0xe0] sm:$0xff]  }
 0x9a3   : > { %4270 = vmatpush3.bf16.msra.mxu0 %v5733_v41  ;;  %4271 = vmatprep.mubr.msk.bf16.mxu0 %vm5053_vm1, %v5052_v4 }
 0x9a4   : > { %4266 = vmatmul.mubr.bf16.vlgmr.msra.gmra.mrb[36].mxu1 %v2531_v57  ;;  %4111 = vmatprep.subr.bf16.mxu0 %v4610_v10  ;;  %v4619_v57 = vld [vmem:[%s5471_s16 + $0x20] sm:$0xff]  }
 0x9a5   : > { %4276 = vmatpush3.bf16.msra.mxu1 %v5738_v43  ;;  %4277 = vmatprep.mubr.msk.bf16.mxu1 %vm5053_vm1, %v5052_v4 }
 0x9a6   : > { %4133 = vmatprep.subr.bf16.mxu1 %v4626_v27 }
 0xa6d   : > { %v5830_v63 = vpop.f32.mrb[32].mxu0 }
 0xa6e   : > { %v4249_v60 = vpop.f32.mrb[33].mxu0 }
 0xa6f   : > { %v2438_v61 = vpop.f32.mrb[34].mxu0  ;;  %v5832_v0 = vpop.f32.mrb[32].mxu1  ;;  %v4620_v60 = vld [vmem:[%s5471_s16 + $0x68] sm:$0xff]  }
 0xa70   : > { %v2695_v31 = vpack.c.bf16 %v5832_v0, %v5830_v63  ;;  %v4250_v35 = vpop.f32.mrb[35].mxu0  ;;  %v4255_v41 = vpop.f32.mrb[33].mxu1  ;;  %v4635_v61 = vld [vmem:[%s5471_s16 + $0xa0] sm:$0xff]  }
 0xa71   : > { %v2484_v1 = vpop.f32.mrb[34].mxu1  ;;  %v4636_v35 = vld [vmem:[%s5471_s16 + $0xe8] sm:$0xff]  }
 0xa72   : > { %v4256_v2 = vpop.f32.mrb[35].mxu1  ;;  %v4621_v41 = vld [vmem:[%s5471_s16 + $0x28] sm:$0xff]   ;;  %v4622_v1 = vld [vmem:[%s5471_s16 + $0x70] sm:$0xff]  }
 0xa73   : > { %v4637_v2 = vld [vmem:[%s5471_s16 + $0xa8] sm:$0xff]  }
 0xa75   : > { %v2525_v3 = vpop.f32.mrb[36].mxu0 }
 0xa76   : > { %v2526_v5 = vadd.f32 %v2525_v3, %v5742_v45  ;;  %v4261_v43 = vpop.f32.mrb[37].mxu0  ;;  %v4638_v3 = vld [vmem:[%s5471_s16 + $0xf0] sm:$0xff]  }
 0xa77   : > { %v2528_v11 = vpop.f32.mrb[38].mxu0  ;;  %v2569_v14 = vpop.f32.mrb[36].mxu1  ;;  %v4624_v43 = vld [vmem:[%s5471_s16 + $0x78] sm:$0xff]  }
 0xa78   : > { %v2570_v12 = vadd.f32 %v2569_v14, %v5742_v45  ;;  %v4262_v16 = vpop.f32.mrb[39].mxu0  ;;  %v4267_v18 = vpop.f32.mrb[37].mxu1  ;;  %v2575_v19 = vsel %vm1967_vm4, %v2526_v5, -inf  ;;  %v4639_v11 = vld [vmem:[%s5471_s16 + $0xb0] sm:$0xff]   ;;  %v4625_v14 = vld [vmem:[%s5471_s16 + $0x38] sm:$0xff]  }
 0xa79   : > { %v2572_v20 = vpop.f32.mrb[38].mxu1  ;;  %2576 = vmax.xlane.f32.xlu0 %v2575_v19  ;;  %v4641_v16 = vld [vmem:[%s5471_s16 + $0xb8] sm:$0xff]  }
 0xa7a   : > { %v4268_v21 = vpop.f32.mrb[39].mxu1  ;;  %v2578_v7 = vsel %vm1967_vm4, %v2570_v12, -inf }
 0xa7b   : > { %2579 = vmax.xlane.f32.xlu1 %v2578_v7 }
 0xb06   : > { %v2577_v40 = vpop.xlane.xlu0 %2576 }
 0xb07   : > { %v2581_v22 = vsub.f32 %v2526_v5, %v2577_v40  ;;  %v4623_v5 = vld [vmem:[%s5471_s16 + $0x30] sm:$0xff]  }
 0xb08   : > { %v2580_v23 = vpop.xlane.xlu1 %2579 }
 0xb09   : > { %v2583_v58 = vmul.f32 1.442695, %v2581_v22  ;;  %v2582_v8 = vsub.f32 %v2570_v12, %v2580_v23  ;;  %v4640_v12 = vld [vmem:[%s5471_s16 + $0xf8] sm:$0xff]  }
 0xb0b   : > { %4686 = vpow2.f32 %v2583_v58  ;;  %v2585_v24 = vmul.f32 1.442695, %v2582_v8 }
 0xb0d   : > { %4688 = vpow2.f32 %v2585_v24 }
 0xb15   : > { %v4687_v45 = vpop.eup %4686 }
 0xb16   : > { %v2587_v30 = vsel %vm1967_vm4, %v4687_v45, 0.0 }
 0xb17   : > { %v4689_v25 = vpop.eup %4688  ;;  %2588 = vadd.xlane.f32.xlu0 %v2587_v30  ;;  %v3991_v30 = vld [vmem:[%s847_s21] ss:$0 sm:$0xff] }
 0xb18   : > { %v2590_v26 = vsel %vm1967_vm4, %v4689_v25, 0.0 }
 0xb19   : > { %2591 = vadd.xlane.f32.xlu1 %v2590_v26 }
 0xba4   : > { %v2589_v28 = vpop.xlane.xlu0 %2588 }
 0xba5   : > { %4690 = vrcp.f32 %v2589_v28 }
 0xba6   : > { %v2592_v29 = vpop.xlane.xlu1 %2591 }
 0xba7   : > { %4692 = vrcp.f32 %v2592_v29 }
 0xbaf   : > { %v4691_v32 = vpop.eup %4690 }
 0xbb0   : > { %v2595_v36 = vmul.f32 %v4691_v32, %v4687_v45 }
 0xbb1   : > { %v4693_v37 = vpop.eup %4692 }
 0xbb2   : > { %v2596_v39 = vmul.f32 %v4693_v37, %v4689_v25  ;;  %v2597_v42 = vpack.c.bf16 %v2595_v36, %v2595_v36  ;;  %v4706_v36 = vld [vmem:[#allocation14] sm:$0xff] }
 0xbb4   : > { %4272 = vmatmul.mubr.msk.bf16.vlgmr.msra.gmra.mrb[40].mxu0 %vm1967_vm4, %v2597_v42  ;;  %v2598_v47 = vpack.c.bf16 %v2596_v39, %v2596_v39  ;;  %v4642_v42 = vld [vmem:[%s5477_s24] sm:$0xff]  }
 0xbb5   : > { %4112 = vmatpush3.bf16.msra.mxu0 %v4611_v38  ;;  %2992 = vmatprep.mubr.bf16.mxu0 %v2694_v33  ;;  %v4632_v33 = vld [vmem:[%s5471_s16 + $0xd8] sm:$0xff]   ;;  %v4707_v38 = vld [vmem:[#allocation14 + $0x8] sm:$0xff] }
 0xbb6   : > { %4278 = vmatmul.mubr.msk.bf16.vlgmr.msra.gmra.mrb[40].mxu1 %vm1967_vm4, %v2598_v47  ;;  %4113 = vmatprep.subr.bf16.mxu0 %v4612_v44  ;;  %v4643_v44 = vld [vmem:[%s5477_s24 + $0x8] sm:$0xff]  }
 0xbb7   : > { %4134 = vmatpush3.bf16.msra.mxu1 %v4627_v46 }
 0xbb8   : > { %4135 = vmatprep.subr.bf16.mxu1 %v4628_v48 }
 0xbb9   : > { %4114 = vmatpush3.bf16.msra.mxu0 %v4613_v50 }
 0xbba   : > { %4115 = vmatprep.subr.bf16.mxu0 %v4614_v51 }
 0xbbb   : > { %4136 = vmatpush3.bf16.msra.mxu1 %v4629_v52 }
 0xbbc   : > { %4137 = vmatprep.subr.bf16.mxu1 %v4630_v49 }
 0xbbd   : > { %4116 = vmatpush3.bf16.msra.mxu0 %v4615_v53 }
 0xbbe   : > { %4117 = vmatprep.subr.bf16.mxu0 %v4616_v15 }
 0xbbf   : > { %4138 = vmatpush3.bf16.msra.mxu1 %v4631_v17 }
 0xbc0   : > { %4139 = vmatprep.subr.bf16.mxu1 %v4632_v33  ;;  %v4644_v33 = vld [vmem:[%s5477_s24 + $0x10] sm:$0xff]  }
 0xbc1   : > { %4118 = vmatpush3.bf16.msra.mxu0 %v4617_v54  ;;  %v4645_v54 = vld [vmem:[%s5477_s24 + $0x18] sm:$0xff]  }
 0xbc2   : > { %4119 = vmatprep.subr.bf16.mxu0 %v4618_v55  ;;  %v4646_v55 = vld [vmem:[%s5477_s24 + $0x20] sm:$0xff]  }
 0xbc3   : > { %4140 = vmatpush3.bf16.msra.mxu1 %v4633_v56  ;;  %v4647_v56 = vld [vmem:[%s5477_s24 + $0x28] sm:$0xff]  }
 0xbc4   : > { %4141 = vmatprep.subr.bf16.mxu1 %v4634_v59  ;;  %v4648_v59 = vld [vmem:[%s5477_s24 + $0x30] sm:$0xff]  }
 0xbc5   : > { %4120 = vmatpush3.bf16.msra.mxu0 %v4619_v57  ;;  %v4649_v57 = vld [vmem:[%s5477_s24 + $0x38] sm:$0xff]  }
 0xbc6   : > { %4121 = vmatprep.subr.bf16.mxu0 %v4620_v60 }
 0xbc7   : > { %4142 = vmatpush3.bf16.msra.mxu1 %v4635_v61 }
 0xbc8   : > { %4143 = vmatprep.subr.bf16.mxu1 %v4636_v35 }
 0xbc9   : > { %4122 = vmatpush3.bf16.msra.mxu0 %v4621_v41 }
 0xbca   : > { %4123 = vmatprep.subr.bf16.mxu0 %v4622_v1 }
 0xbcb   : > { %4144 = vmatpush3.bf16.msra.mxu1 %v4637_v2 }
 0xbcc   : > { %4145 = vmatprep.subr.bf16.mxu1 %v4638_v3 }
 0xbcd   : > { %4124 = vmatpush3.bf16.msra.mxu0 %v4623_v5  ;;  %v4024_v5 = vld [vmem:[%s850_s9] ss:$0 sm:$0xff] }
 0xbce   : > { %4125 = vmatprep.subr.bf16.mxu0 %v4624_v43 }
 0xbcf   : > { %4146 = vmatpush3.bf16.msra.mxu1 %v4639_v11 }
 0xbd0   : > { %4147 = vmatprep.subr.bf16.mxu1 %v4640_v12 }
 0xbd1   : > { %4126 = vmatpush3.bf16.msra.mxu0 %v4625_v14 }
 0xbd2   : > { %4281 = vmatprep.subr.bf16.mxu0 %v5052_v4 }
 0xbd3   : > { %4148 = vmatpush3.bf16.msra.mxu1 %v4641_v16  ;;  %v4025_v16 = vld [vmem:[%s853_s19] ss:$0 sm:$0xff] }
 0xbd4   : > { %2993 = vmatmul.mubr.bf16.vlgmr.msra.gmra.mrb[44].mxu0 %v2693_v34  ;;  %4301 = vmatprep.subr.bf16.mxu1 %v5052_v4 }
 0xbd5   : > { %4297 = vmatprep.mubr.msk.bf16.mxu0 %vm5053_vm1, %v5052_v4  ;;  %4282 = vmatpush3.bf16.msra.mxu0 %v4642_v42 }
 0xbd6   : > { %4283 = vmatprep.subr.bf16.mxu0 %v5052_v4 }
 0xbd9   : > { %4284 = vmatpush3.bf16.msra.mxu0 %v4643_v44 }
 0xbda   : > { %4285 = vmatprep.subr.bf16.mxu0 %v5052_v4 }
 0xbdd   : > { %4286 = vmatpush3.bf16.msra.mxu0 %v4644_v33 }
 0xbde   : > { %4287 = vmatprep.subr.bf16.mxu0 %v5052_v4 }
 0xbe1   : > { %4288 = vmatpush3.bf16.msra.mxu0 %v4645_v54 }
 0xbe2   : > { %4289 = vmatprep.subr.bf16.mxu0 %v5052_v4 }
 0xbe5   : > { %4290 = vmatpush3.bf16.msra.mxu0 %v4646_v55 }
 0xbe6   : > { %4291 = vmatprep.subr.bf16.mxu0 %v5052_v4 }
 0xbe9   : > { %4292 = vmatpush3.bf16.msra.mxu0 %v4647_v56 }
 0xbea   : > { %4293 = vmatprep.subr.bf16.mxu0 %v5052_v4 }
 0xbed   : > { %4294 = vmatpush3.bf16.msra.mxu0 %v4648_v59 }
 0xbee   : > { %4295 = vmatprep.subr.bf16.mxu0 %v5052_v4 }
 0xbf1   : > { %4296 = vmatpush3.bf16.msra.mxu0 %v4649_v57 }
 0xc87   : > { %v2640_v18 = vpop.f32.mrb[40].mxu0 }
 0xc88   : > { %v4273_v19 = vpop.f32.mrb[41].mxu0 }
 0xc89   : > { %v2643_v20 = vpop.f32.mrb[42].mxu0  ;;  %v2687_v21 = vpop.f32.mrb[40].mxu1 }
 0xc8a   : > { %v2696_v7 = vpack.c.bf16 %v2687_v21, %v2640_v18  ;;  %v4274_v40 = vpop.f32.mrb[43].mxu0  ;;  %v4279_v22 = vpop.f32.mrb[41].mxu1 }
 0xc8b   : > { %v2690_v23 = vpop.f32.mrb[42].mxu1  ;;  %v4651_v40 = vld [vmem:[%s5479_s7 + $0x8] sm:$0xff]   ;;  %v4652_v22 = vld [vmem:[%s5479_s7 + $0x10] sm:$0xff]  }
 0xc8c   : > { %v4280_v62 = vpop.f32.mrb[43].mxu1  ;;  %3033 = vmatprep.mubr.bf16.mxu1 %v2696_v7  ;;  %v4650_v7 = vld [vmem:[%s5479_s7] sm:$0xff]   ;;  %v4653_v23 = vld [vmem:[%s5479_s7 + $0x18] sm:$0xff]  }
 0xc8d   : > { %3034 = vmatmul.mubr.bf16.vlgmr.msra.gmra.mrb[44].mxu1 %v2695_v31  ;;  %v4654_v62 = vld [vmem:[%s5479_s7 + $0x20] sm:$0xff]  }
 0xc8e   : > { %4317 = vmatprep.mubr.msk.bf16.mxu1 %vm5053_vm1, %v5052_v4  ;;  %4302 = vmatpush3.bf16.msra.mxu1 %v4650_v7 }
 0xc8f   : > { %4303 = vmatprep.subr.bf16.mxu1 %v5052_v4 }
 0xc92   : > { %4304 = vmatpush3.bf16.msra.mxu1 %v4651_v40 }
 0xc93   : > { %4305 = vmatprep.subr.bf16.mxu1 %v5052_v4 }
 0xc96   : > { %4306 = vmatpush3.bf16.msra.mxu1 %v4652_v22 }
 0xc97   : > { %4307 = vmatprep.subr.bf16.mxu1 %v5052_v4 }
 0xc9a   : > { %4308 = vmatpush3.bf16.msra.mxu1 %v4653_v23 }
 0xc9b   : > { %4309 = vmatprep.subr.bf16.mxu1 %v5052_v4 }
 0xc9e   : > { %4310 = vmatpush3.bf16.msra.mxu1 %v4654_v62 }
 0xc9f   : > { %4311 = vmatprep.subr.bf16.mxu1 %v5052_v4 }
 0xca7   : > { %v4127_v9 = vpop.f32.mrb[44].mxu0 }
 0xca8   : > { %v4128_v34 = vpop.f32.mrb[45].mxu0 }
 0xca9   : > { %v4129_v58 = vadd.f32 %v4128_v34, %v4127_v9  ;;  %v4130_v8 = vpop.f32.mrb[46].mxu0  ;;  %v4655_v9 = vld [vmem:[%s5479_s7 + $0x28] sm:$0xff]   ;;  %v4656_v34 = vld [vmem:[%s5479_s7 + $0x30] sm:$0xff]  }
 0xcaa   : > { %v4131_v24 = vpop.f32.mrb[47].mxu0  ;;  %4312 = vmatpush3.bf16.msra.mxu1 %v4655_v9 }
 0xcab   : > { %v4132_v45 = vadd.f32 %v4131_v24, %v4130_v8  ;;  %v2995_v10 = vadd.f32 %v4129_v58, %v3991_v30  ;;  %4313 = vmatprep.subr.bf16.mxu1 %v5052_v4  ;;  %v4657_v58 = vld [vmem:[%s5479_s7 + $0x38] sm:$0xff]  }
 0xcac   : > { %v4026_v8 = vld [vmem:[%s856_s25] ss:$0 sm:$0xff] }
 0xcad   : > { %v2998_v27 = vadd.f32 %v4132_v45, %v3991_v30 }
 0xcae   : > { %4314 = vmatpush3.bf16.msra.mxu1 %v4656_v34 }
 0xcaf   : > { %4315 = vmatprep.subr.bf16.mxu1 %v5052_v4 }
 0xcb2   : > { %4316 = vmatpush3.bf16.msra.mxu1 %v4657_v58 }
 0xd60   : > { %v4149_v25 = vpop.f32.mrb[44].mxu1 }
 0xd61   : > { %v4150_v26 = vpop.f32.mrb[45].mxu1 }
 0xd62   : > { %v4151_v63 = vadd.f32 %v4150_v26, %v4149_v25  ;;  %v4152_v0 = vpop.f32.mrb[46].mxu1 }
 0xd63   : > { %v4153_v31 = vpop.f32.mrb[47].mxu1 }
 0xd64   : > { %v3036_v28 = vadd.f32 %v4151_v63, %v2995_v10  ;;  %v4154_v29 = vadd.f32 %v4153_v31, %v4152_v0 }
 0xd66   : > { %v3039_v32 = vadd.f32 %v4154_v29, %v2998_v27  ;;  %v5896_v37 = vadd.f32 %v4706_v36, %v3036_v28 }
 0xd68   : > { %3046 = vadd.xlane.f32.xlu0 %v5896_v37  ;;  %v5899_v39 = vadd.f32 %v4707_v38, %v3039_v32 }
 0xd6a   : > { %3048 = vadd.xlane.f32.xlu1 %v5899_v39 }
 0xdf5   : > { %v3047_v46 = vpop.xlane.xlu0 %3046 }
 0xdf6   : > { %v3050_v47 = vmul.f32 0.03125, %v3047_v46 }
 0xdf7   : > { %v3049_v48 = vpop.xlane.xlu1 %3048 }
 0xdf8   : > { %v3052_v50 = vsub.f32 %v5896_v37, %v3050_v47  ;;  %v3051_v51 = vmul.f32 0.03125, %v3049_v48  ;;  %v4035_v47 = vld [vmem:[%s859_s14] ss:$0 sm:$0xff] }
 0xdfa   : > { %v3053_v52 = vsub.f32 %v5899_v39, %v3051_v51  ;;  %v3054_v49 = vsel %vm871_vm0, %v3052_v50, 0.0 }
 0xdfb   : > { %v3056_v53 = vmul.f32 %v3054_v49, %v3054_v49 }
 0xdfc   : > { %v3055_v15 = vsel %vm871_vm0, %v3053_v52, 0.0 }
 0xdfd   : > { %3058 = vadd.xlane.f32.xlu0 %v3056_v53  ;;  %v3057_v17 = vmul.f32 %v3055_v15, %v3055_v15 }
 0xdff   : > { %3060 = vadd.xlane.f32.xlu1 %v3057_v17 }
 0xe8a   : > { %v3059_v60 = vpop.xlane.xlu0 %3058 }
 0xe8b   : > { %v3062_v61 = vmul.f32 0.03125, %v3059_v60 }
 0xe8c   : > { %v3061_v35 = vpop.xlane.xlu1 %3060 }
 0xe8d   : > { %v3064_v41 = vadd.f32 1e-05, %v3062_v61  ;;  %v3063_v1 = vmul.f32 0.03125, %v3061_v35 }
 0xe8f   : > { %4694 = vrsqrt.f32 %v3064_v41  ;;  %v3065_v2 = vadd.f32 1e-05, %v3063_v1 }
 0xe91   : > { %4696 = vrsqrt.f32 %v3065_v2 }
 0xe99   : > { %v4695_v3 = vpop.eup %4694 }
 0xe9a   : > { %v3068_v43 = vmul.f32 %v4695_v3, %v3054_v49 }
 0xe9b   : > { %v4697_v11 = vpop.eup %4696 }
 0xe9c   : > { %v3069_v14 = vmul.f32 %v4697_v11, %v3055_v15  ;;  %v3076_v12 = vmul.f32 %v4024_v5, %v3068_v43 }
 0xe9e   : > { %v3077_v18 = vmul.f32 %v4024_v5, %v3069_v14  ;;  %v3084_v19 = vadd.f32 %v4025_v16, %v3076_v12 }
 0xea0   : > { %v3085_v20 = vadd.f32 %v4025_v16, %v3077_v18 }
 0xea2   : > { %v3086_v21 = vpack.c.bf16 %v3085_v20, %v3084_v19 }
 0xea4   : > { %4298 = vmatmul.mubr.bf16.vlgmr.msra.gmra.mrb[48].mxu0 %v3086_v21 }
 0xf77   : > { %v3192_v24 = vpop.f32.mrb[48].mxu0 }
 0xf78   : > { %v3193_v45 = vadd.f32 %v4026_v8, %v3192_v24  ;;  %v4299_v30 = vpop.f32.mrb[49].mxu0 }
 0xf79   : > { %v3195_v25 = vpop.f32.mrb[50].mxu0 }
 0xf7a   : > { %v3199_v26 = vmul.f32 -1.702, %v3193_v45  ;;  %v3196_v10 = vadd.f32 %v4026_v8, %v3195_v25  ;;  %v4300_v63 = vpop.f32.mrb[51].mxu0 }
 0xf7c   : > { %v3201_v0 = vmul.f32 1.442695, %v3199_v26  ;;  %v3200_v31 = vmul.f32 -1.702, %v3196_v10 }
 0xf7e   : > { %4698 = vpow2.f32 %v3201_v0  ;;  %v3203_v27 = vmul.f32 1.442695, %v3200_v31 }
 0xf80   : > { %4700 = vpow2.f32 %v3203_v27 }
 0xf88   : > { %v4699_v4 = vpop.eup %4698 }
 0xf89   : > { %v3205_v28 = vadd.f32 1.0, %v4699_v4 }
 0xf8a   : > { %v4701_v29 = vpop.eup %4700 }
 0xf8b   : > { %4702 = vrcp.f32 %v3205_v28  ;;  %v3206_v32 = vadd.f32 1.0, %v4701_v29 }
 0xf8d   : > { %4704 = vrcp.f32 %v3206_v32 }
 0xf95   : > { %v4703_v36 = vpop.eup %4702 }
 0xf96   : > { %v3209_v42 = vmul.f32 %v4703_v36, %v3193_v45 }
 0xf97   : > { %v4705_v38 = vpop.eup %4704 }
 0xf98   : > { %v3210_v44 = vmul.f32 %v4705_v38, %v3196_v10 }
 0xf9a   : > { %v3211_v46 = vpack.c.bf16 %v3210_v44, %v3209_v42 }
 0xf9c   : > { %4318 = vmatmul.mubr.bf16.vlgmr.msra.gmra.mrb[48].mxu1 %v3211_v46 }
0x106e   : > { %3329 = sbr.rel (%p4044_p3) target bundleno = 4215 (0x1077), region = 124 }
0x106f   : > { %v3317_v48 = vpop.f32.mrb[48].mxu1 }
0x1070   : > { %v3318_v50 = vadd.f32 %v4035_v47, %v3317_v48  ;;  %v4319_v51 = vpop.f32.mrb[49].mxu1 }
0x1071   : > { %v3320_v52 = vpop.f32.mrb[50].mxu1 }
0x1072   : > { %v3324_v49 = vadd.f32 %v3318_v50, %v5896_v37  ;;  %v3321_v53 = vadd.f32 %v4035_v47, %v3320_v52  ;;  %v4320_v15 = vpop.f32.mrb[51].mxu1 }
0x1074   : > { %v5960_v17 = vadd.f32 %v3321_v53, %v5899_v39  ;;  %3330 = vst [vmem:[#allocation14] sm:$0xff] (!%p4044_p3), %v3324_v49 }
0x1076   : > { %3331 = vst [vmem:[#allocation14 + $0x8] sm:$0xff] %v5960_v17 }
0x1077 PF: > { %p4045_p12 = scmp.ne.s32.totalorder %s5176_s0, 1 }
0x1078   : > { %s6149_s20 = sld [smem:[#allocation28_spill]] (!%p4045_p12)  ;;  %vm3337_vm5 = vcmask (!%p4045_p12), 58368   ;;  %v4349_v18 = vpack.c.bf16 (!%p4045_p12), %v5960_v17, %v3324_v49  ;;  %v5055_v19 = vmov (!%p4045_p12), 0.0|0.0   ;;  %vm5056_vm9 = vmmov (!%p4045_p12), 0   ;;  %v4708_v22 = vld [vmem:[#allocation13] sm:$0xff] (!%p4045_p12)   ;;  %v4709_v62 = vld [vmem:[#allocation13 + $0x8] sm:$0xff] (!%p4045_p12)  }
0x1079   : > { %3335 = sbr.rel (%p4045_p12) target bundleno = 5248 (0x1480), region = 128  ;;  %4348 = vmatprep.subr.bf16.mxu0 (!%p4045_p12), %v5055_v19  ;;  %v5057_v20 = vmov (!%p4045_p12), 0.0   ;;  %v4710_v34 = vld [vmem:[#allocation13 + $0x10] sm:$0xff] (!%p4045_p12)   ;;  %v4711_v58 = vld [vmem:[#allocation13 + $0x18] sm:$0xff] (!%p4045_p12)   ;;  %v4712_v8 = vld [vmem:[#allocation13 + $0x20] sm:$0xff] (!%p4045_p12)   ;;  %v3370_v10 = vmul.u32 (!%p4045_p12), 8, %v5668_v6 }
0x107a   : > { %4350 = vmatpush3.bf16.msra.mxu0 (!%p4045_p12), %v4349_v18  ;;  %4325 = vmatprep.mubr.msk.f32.mxu0 (!%p4045_p12), %vm5056_vm9, %v5057_v20  ;;  %v4713_v24 = vld [vmem:[#allocation13 + $0x28] sm:$0xff] (!%p4045_p12)   ;;  %v4714_v45 = vld [vmem:[#allocation13 + $0x30] sm:$0xff] (!%p4045_p12)   ;;  %vm3375_vm10 = vcmask (!%p4045_p12), 130048   ;;  %v4715_v38 = vld [vmem:[#allocation13 + $0x38] sm:$0xff] (!%p4045_p12)   ;;  %s6150_s14 = sld [smem:[#allocation39_spill]] (!%p4045_p12)  ;;  %s6151_s4 = sld [smem:[#allocation40_spill]] (!%p4045_p12) }
0x107b   : > { %4328 = vmatprep.subr.bf16.mxu1 (!%p4045_p12), %v5057_v20  ;;  %4344 = vmatprep.mubr.msk.bf16.mxu1 (!%p4045_p12), %vm5056_vm9, %v5057_v20 }
0x107c   : > { %4329 = vmatpush3.bf16.msra.mxu1 (!%p4045_p12), %v4708_v22 }
0x107d   : > { %4330 = vmatprep.subr.bf16.mxu1 (!%p4045_p12), %v5057_v20 }
0x107e   : > { %v3336_v33 = vld [vmem:[%s6149_s20] sm:$0x3] (!%p4045_p12) }
0x107f   : > { %v3338_v37 = vsel (!%p4045_p12), %vm3337_vm5, %v3336_v33, 2147483648 }
0x1080   : > { %v3340_v54 = vshra.s32 %v3338_v37, 16  ;;  %v3339_v55 = vand.u32 65535, %v3338_v37  ;;  %4331 = vmatpush3.bf16.msra.mxu1 %v4709_v62  ;;  %v4056_v47 = vld [vmem:[%s6150_s14] ss:$0 sm:$0xff] }
0x1081   : > { %4332 = vmatprep.subr.bf16.mxu1 %v5057_v20  ;;  %v4057_v50 = vld [vmem:[%s6151_s4] ss:$0 sm:$0xff] }
0x1082   : > { %v3342_v39 = vcvt.s32.f32 %v3340_v54  ;;  %v3341_v56 = vcvt.s32.f32 %v3339_v55 }
0x1084   : > { %3343 = vmax.xlane.f32.xlu0 %v3342_v39  ;;  %4333 = vmatpush3.bf16.msra.mxu1 %v4710_v34 }
0x1085   : > { %4334 = vmatprep.subr.bf16.mxu1 %v5057_v20 }
0x1088   : > { %4335 = vmatpush3.bf16.msra.mxu1 %v4711_v58 }
0x1089   : > { %4336 = vmatprep.subr.bf16.mxu1 %v5057_v20 }
0x108c   : > { %4337 = vmatpush3.bf16.msra.mxu1 %v4712_v8 }
0x108d   : > { %4338 = vmatprep.subr.bf16.mxu1 %v5057_v20 }
0x1090   : > { %4339 = vmatpush3.bf16.msra.mxu1 %v4713_v24 }
0x1091   : > { %4340 = vmatprep.subr.bf16.mxu1 %v5057_v20 }
0x1094   : > { %4341 = vmatpush3.bf16.msra.mxu1 %v4714_v45 }
0x1095   : > { %4342 = vmatprep.subr.bf16.mxu1 %v5057_v20 }
0x1098   : > { %4343 = vmatpush3.bf16.msra.mxu1 %v4715_v38 }
0x1111   : > { %v3344_v59 = vpop.xlane.xlu0 %3343 }
0x1112   : > { %vm3345_vm6 = vcmp.eq.f32.partialorder %v3342_v39, %v3344_v59  ;;  %v3350_v60 = vcvt.f32.s32 %v3344_v59 }
0x1113   : > { %v3346_v57 = vsel %vm3345_vm6, %v3341_v56, -inf }
0x1114   : > { %3347 = vmax.xlane.f32.xlu0 %v3346_v57  ;;  %v3351_v35 = vshll.u32 %v3350_v60, 16 }
0x1118   : > { %3557 = vadd.xlane.f32.xlu0 %v3324_v49 }
0x11a1   : > { %v3348_v61 = vpop.xlane.xlu0 %3347 }
0x11a2   : > { %v3349_v41 = vcvt.f32.s32 %v3348_v61 }
0x11a4   : > { %v3352_v1 = vadd.s32 %v3351_v35, %v3349_v41 }
0x11a5   : > { %v3558_v21 = vpop.xlane.xlu0 %3557 }
0x11a6   : > { %vm3353_vm7 = vcmp.eq.s32.totalorder %v3336_v33, %v3352_v1  ;;  %v3561_v7 = vmul.f32 0.03125, %v3558_v21 }
0x11a7   : > { %v3354_v2 = vsel %vm3353_vm7, %v5532_v13, 8 }
0x11a8   : > { %v3355_v3 = vsel %vm3337_vm5, %v3354_v2, 2147483647  ;;  %v3563_v40 = vsub.f32 %v3324_v49, %v3561_v7 }
0x11a9   : > { %v3357_v5 = vshra.s32 %v3355_v3, 16  ;;  %v3356_v11 = vand.u32 65535, %v3355_v3 }
0x11aa   : > { %v3565_v23 = vsel %vm871_vm0, %v3563_v40, 0.0 }
0x11ab   : > { %v3359_v43 = vcvt.s32.f32 %v3357_v5  ;;  %v3358_v12 = vcvt.s32.f32 %v3356_v11  ;;  %v3567_v9 = vmul.f32 %v3565_v23, %v3565_v23 }
0x11ad   : > { %3360 = vmin.xlane.f32.xlu1 %v3359_v43  ;;  %3569 = vadd.xlane.f32.xlu0 %v3567_v9 }
0x123a   : > { %v3361_v14 = vpop.xlane.xlu1 %3360  ;;  %v3570_v6 = vpop.xlane.xlu0 %3569 }
0x123b   : > { %vm3362_vm8 = vcmp.eq.f32.partialorder %v3359_v43, %v3361_v14  ;;  %v3367_v30 = vcvt.f32.s32 %v3361_v14  ;;  %v3573_v42 = vmul.f32 0.03125, %v3570_v6 }
0x123c   : > { %v3363_v16 = vsel %vm3362_vm8, %v3358_v12, inf }
0x123d   : > { %3364 = vmin.xlane.f32.xlu1 %v3363_v16  ;;  %v3368_v26 = vshll.u32 %v3367_v30, 16  ;;  %v3575_v44 = vadd.f32 1e-05, %v3573_v42 }
0x123f   : > { %4716 = vrsqrt.f32 %v3575_v44 }
0x1241   : > { %3559 = vadd.xlane.f32.xlu1 %v5960_v17 }
0x1249   : > { %v4717_v46 = vpop.eup %4716 }
0x124a   : > { %v3579_v48 = vmul.f32 %v4717_v46, %v3565_v23 }
0x12ca   : > { %v3365_v25 = vpop.xlane.xlu1 %3364 }
0x12cb   : > { %v3366_v63 = vcvt.f32.s32 %v3365_v25 }
0x12cd   : > { %v3369_v0 = vadd.s32 %v3368_v26, %v3366_v63 }
0x12ce   : > { %v3560_v31 = vpop.xlane.xlu1 %3559 }
0x12cf   : > { %v3371_v27 = vadd.s32 %v3370_v10, %v3369_v0  ;;  %v3562_v4 = vmul.f32 0.03125, %v3560_v31 }
0x12d1   : > { %vm3372_vm11 = vcmp.eq.s32.totalorder %v5532_v13, %v3371_v27  ;;  %v3564_v28 = vsub.f32 %v5960_v17, %v3562_v4  ;;  %v3587_v13 = vmul.f32 %v4056_v47, %v3579_v48 }
0x12d2   : > { %v4046_v29 = vsel %vm3372_vm11, 1.0, %v5057_v20 }
0x12d3   : > { %4326 = vmatmul.mubr.msk.f32.vlgmr.msra.gmra.mrb[0].mxu0 %vm3375_vm10, %v4046_v29  ;;  %v3566_v32 = vsel %vm871_vm0, %v3564_v28, 0.0  ;;  %v3595_v51 = vadd.f32 %v4057_v50, %v3587_v13 }
0x12d4   : > { %v3568_v36 = vmul.f32 %v3566_v32, %v3566_v32 }
0x12d5   : > { %3597 = vst [vmem:[#allocation14] sm:$0xff] %v3595_v51 }
0x12d6   : > { %3571 = vadd.xlane.f32.xlu1 %v3568_v36 }
0x1363   : > { %v3572_v52 = vpop.xlane.xlu1 %3571 }
0x1364   : > { %v3574_v49 = vmul.f32 0.03125, %v3572_v52 }
0x1366   : > { %v3576_v53 = vadd.f32 1e-05, %v3574_v49 }
0x1368   : > { %4718 = vrsqrt.f32 %v3576_v53 }
0x1372   : > { %v4719_v15 = vpop.eup %4718 }
0x1373   : > { %v3580_v17 = vmul.f32 %v4719_v15, %v3566_v32 }
0x1375   : > { %v3588_v33 = vmul.f32 %v4056_v47, %v3580_v17 }
0x1377   : > { %v3596_v37 = vadd.f32 %v4057_v50, %v3588_v33 }
0x1379   : > { %3598 = vst [vmem:[#allocation14 + $0x8] sm:$0xff] %v3596_v37 }
0x13a6   : > { %v3445_v54 = vpop.f32.mrb[0].mxu0 }
0x13a7   : > { %v3449_v39 = vpack.c.bf16 %v3445_v54, %v3445_v54  ;;  %v4327_v55 = vpop.f32.mrb[1].mxu0 }
0x13a9   : > { %4345 = vmatmul.mubr.bf16.vlgmr.msra.gmra.mrb[0].mxu1 %v3449_v39 }
0x147c   : > { %v3548_v56 = vpop.f32.mrb[0].mxu1 }
0x147d   : > { %3554 = vst [vmem:[#allocation15] sm:$0x3] %v3548_v56  ;;  %v4346_v59 = vpop.f32.mrb[1].mxu1 }
0x147e   : > { %v3551_v57 = vpop.f32.mrb[2].mxu1 }
0x147f   : > { %v4347_v60 = vpop.f32.mrb[3].mxu1 }
0x1480 PF: > { %p4411_p2 = scmp.eq.s32.totalorder %s5176_s0, 1  ;;  %s5058_s2 = smov [#allocation14]  }
0x1481   : > { %s3605_s22 = sshll.u32 %s5058_s2, 4  ;;  %s3606_s22 = int_to_ptr.vmem [resolvable:$true] %s3605_s22 }
0x1482   : > { %s4926_s29 = scalar_lea.vmem %s3606_s22, 256  ;;  %p4933_p10 = scmp.lt.s32.totalorder %s3606_s22, %s3606_s22 }
0x1483   : > { %p4927_p1 = scmp.ne.s32.totalorder %s3606_s22, %s4926_s29  ;;  %p4934_p6 = scmp.lt.s32.totalorder %s4926_s29, %s4926_s29 }
0x1485   : > { %p4928_p7 = pnand %p4927_p1, %p4411_p2  ;;  %p4935_p4 = por %p4934_p6, %p4933_p10 }
0x1487   : > { %p4929_p0 = pneg %p4928_p7 }
0x1489   : > { %p4936_p11 = pnand %p4935_p4, %p4929_p0 }
0x148b   : > { %4939 = shalt.err (!%p4936_p11)
}
0x148c   : > { %s6152_s16 = sld [smem:[#allocation42_spill]] }
0x1492   : > { %s4940_s11 = scalar_lea.hbm %s6152_s16, 256 }
0x1493   : > { %p4941_p9 = scmp.ne.s32.totalorder %s6152_s16, %s4940_s11  ;;  %p4946_p13 = scmp.lt.u32.totalorder %s4940_s11, %s6152_s16 }
0x1495   : > { %p4942_p5 = pnand %p4941_p9, %p4411_p2 }
0x1497   : > { %p4943_p8 = pneg %p4942_p5 }
0x1499   : > { %p4948_p3 = pnand %p4946_p13, %p4943_p8 }
0x149b   : > { %4951 = shalt.err (!%p4948_p3)
}
0x149c   : > { %s5059_s17 = smov 128   ;;  %s5060_s23 = smov 8  }
0x149d   : > { %4376 = dma.vmem_to_hbm [thread:$0]  (%p4411_p2), %s3606_s22, 256, %s6152_s16, [#allocation4], %s5059_s17, %s5059_s17, %s5060_s23  }
0x149e   : > { %s5061_s7 = smov [#allocation15]  }
0x149f   : > { %s3619_s8 = sshll.u32 %s5061_s7, 4  ;;  %s3620_s8 = int_to_ptr.vmem [resolvable:$true] %s3619_s8 }
0x14a0   : > { %s4952_s26 = scalar_lea.vmem %s3620_s8, 32  ;;  %p4959_p0 = scmp.lt.s32.totalorder %s3620_s8, %s3620_s8 }
0x14a1   : > { %p4953_p12 = scmp.ne.s32.totalorder %s3620_s8, %s4952_s26  ;;  %p4960_p10 = scmp.lt.s32.totalorder %s4952_s26, %s4952_s26 }
0x14a3   : > { %p4954_p1 = pnand %p4953_p12, %p4411_p2  ;;  %p4961_p6 = por %p4960_p10, %p4959_p0 }
0x14a5   : > { %p4955_p7 = pneg %p4954_p1 }
0x14a7   : > { %p4962_p4 = pnand %p4961_p6, %p4955_p7 }
0x14a9   : > { %4965 = shalt.err (!%p4962_p4)
}
0x14aa   : > { %s6153_s20 = sld [smem:[#allocation43_spill]] }
0x14b0   : > { %s4966_s25 = scalar_lea.hbm %s6153_s20, 32 }
0x14b1   : > { %p4967_p11 = scmp.ne.s32.totalorder %s6153_s20, %s4966_s25  ;;  %p4972_p8 = scmp.lt.u32.totalorder %s4966_s25, %s6153_s20 }
0x14b3   : > { %p4968_p9 = pnand %p4967_p11, %p4411_p2 }
0x14b5   : > { %p4969_p5 = pneg %p4968_p9 }
0x14b7   : > { %p4974_p13 = pnand %p4972_p8, %p4969_p5 }
0x14b9   : > { %4977 = shalt.err (!%p4974_p13)
}
0x14ba   : > { %4378 = dma.vmem_to_hbm [thread:$0]  (%p4411_p2), %s3620_s8, 32, %s6153_s20, [#allocation16]  }
0x14bb   : > { %5015 = dma.done.wait (%p4411_p2), [#allocation4], 256  }
0x14bc   : > { %5017 = vsyncadd (%p4411_p2), [#allocation4], 4294967040 }
0x14bd   : > { %5019 = dma.done.wait (%p4411_p2), [#allocation16], 32  }
0x14be   : > { %5021 = vsyncadd (%p4411_p2), [#allocation16], 4294967264 }
0x14bf PF: > { %s6154_s30 = sld [smem:[#allocation25_spill]]  ;;  %s6155_s22 = sld [smem:[#allocation24_spill]] }
0x14c0   : > { %s6156_s29 = sld [smem:[#allocation26_spill]]  ;;  %s6157_s27 = smov %s5028_s28 }
0x14c5   : > { %p38_p3 = scmp.ge.s32.totalorder %s6154_s30, 4   ;;  %s6158_s28 = smov %s6155_s22 }
0x14c7   :  { %40 = sbr.rel (!%p38_p3) target bundleno = 28 (0x1c), region = 223 }
0x14ce   :  { %3636 = vsyncpa [#allocation3], 1 }
0x14cf   :  { %3638 = vsyncpa [#allocation3 + $0x1], 1 }
0x14d0   :  { %3639 = vsyncpa [#allocation6], 1 }
0x14d1   :  { %3641 = vsyncpa [#allocation6 + $0x1], 1 }
0x14d2   :  { %3642 = vsyncpa [#allocation9], 1 }
0x14d3   :  { %3644 = vsyncpa [#allocation9 + $0x1], 1 }
0x14d4   :  { %3645 = vsyncpa [#allocation12], 1 }
0x14d5   :  { %3647 = vsyncpa [#allocation12 + $0x1], 1 }
0x14d6   :  { %3648 = vsyncpa [#allocation4], 1 }
0x14d7   :  { %3650 = vsyncpa [#allocation4 + $0x1], 1 }
0x14d8   :  { %3651 = vsyncpa [#allocation16], 1 }

</bundles_post_ra>
